<compile_context>
chip_gen: v7x
topology: tpu7x:2x2x1
jax: 0.10.0
libtpu: 0.0.40
codegen_flags: <defaults>
</compile_context>

<pallas_src>
import functools

import numpy as np
import jax
import jax.numpy as jnp
from jax import lax
from jax.experimental import pallas as pl
from jax.experimental.pallas import tpu as pltpu


def _round_up(a, m):
    return (a + m - 1) // m * m


def _sla_kernel(x_ref, wq_ref, wk_ref, wv_ref, bq_ref, koff_ref, bv_ref,
                blk_ref, vm_ref, wproj_ref, bproj_ref,
                o_ref, vpad_ref, *,
                win_tokens, shifts, pad_rows, mxu_dtype):
    TBN, CP = x_ref.shape
    N = win_tokens
    TB = TBN // N
    f32 = jnp.float32

    def mm(a, b):  # MXU matmul: cast operands only, accumulate in f32
        return jnp.dot(a.astype(mxu_dtype), b.astype(mxu_dtype),
                       preferred_element_type=f32)

    x = x_ref[...]

    # ---- qkv projections over the whole (TB*N, CP) row block (one MXU pass
    #      each).  k's bias + positional encoding are per-window and added in
    #      the window loop below. ----
    q = jnp.maximum(mm(x, wq_ref[...]) + bq_ref[...], 0.0)
    k_lin = mm(x, wk_ref[...])
    v = mm(x, wv_ref[...]) + bv_ref[...]

    # ---- zero-padded copy of v for the flat-token-shift depthwise conv ----
    vpad_ref[pl.ds(0, pad_rows), :] = jnp.zeros((pad_rows, CP), f32)
    vpad_ref[pl.ds(pad_rows, TBN), :] = v
    vpad_ref[pl.ds(pad_rows + TBN, pad_rows), :] = jnp.zeros((pad_rows, CP), f32)

    # ---- per-window linear attention + depthwise conv ----
    # The token contraction is inherently per-window.  Heads are fused via the
    # (CP, CP) block-diagonal 0/1 mask, so one q @ (k^T v) matmul covers all
    # heads ((q k^T) v == q (k^T v)).  Each window's result goes straight into
    # o_ref (no concatenates; live ranges end at the store).
    ksq = len(shifts)
    for w in range(TB):
        lo = w * N  # static -> all slices below are static / aligned offsets
        blk = blk_ref[...]
        koff = koff_ref[...]

        qw = lax.slice(q, (lo, 0), (lo + N, CP))
        vw = lax.slice(v, (lo, 0), (lo + N, CP))
        kw = jnp.maximum(lax.slice(k_lin, (lo, 0), (lo + N, CP)) + koff, 0.0)

        ksum = jnp.sum(kw, axis=0, keepdims=True)                      # (1, CP)
        kv_w = lax.dot_general(kw.astype(mxu_dtype), vw.astype(mxu_dtype),
                               (((0,), (0,)), ((), ())),
                               preferred_element_type=f32) * blk       # (CP, CP)
        num_w = mm(qw, kv_w)                                           # (N, CP)
        # den could be computed head-compressed (sum over head_dim) instead of a
        # blk matmul; kept as MXU work since that unit has slack here.
        den = mm(qw * ksum, blk) + 1e-6                                # (N, CP)
        attn_w = num_w * pl.reciprocal(den, approx=True)

        # depthwise KxK conv: one shifted (N, CP) slice + fused
        # (validity-mask * tap-weight) multiply-add per tap.  Cross-window /
        # out-of-grid reads are killed by the mask baked into vm.
        base = pad_rows + lo
        conv_w = vpad_ref[pl.ds(base + shifts[0], N), :] * vm_ref[0]
        for off in range(1, ksq):
            shifted = vpad_ref[pl.ds(base + shifts[off], N), :]
            conv_w = conv_w + shifted * vm_ref[off]

        o_ref[lo:lo + N, :] = attn_w + conv_w

    # ---- output projection over the full block (dwc bias folded into bproj) ----
    y = o_ref[...]
    o_ref[...] = (mm(y, wproj_ref[...]) + bproj_ref[...]).astype(o_ref.dtype)


def _vmem_capacity_bytes():
    try:
        info = pltpu.get_tpu_info()
        cap = getattr(info, "vmem_capacity_bytes", None)
        if cap:
            return int(cap)
    except Exception:
        pass
    return 64 << 20  # conservative default (v7x per-core VMEM)


def _vmem_need_bytes(rows, n_tok, cp, ksq, pad_rows, x_bytes):
    """Rough per-grid-step working set: double-buffered blocks + scratch + large
    in-kernel temporaries (q, k_lin, v, projection input, ...)."""
    dbl = 2
    x_block = dbl * rows * cp * x_bytes
    out_block = dbl * rows * cp * 4
    weights = dbl * cp * cp * (4 * x_bytes + 4)          # Wq/Wk/Wv/Wproj + blk
    taps = dbl * ksq * n_tok * cp * 4                    # fused mask*weight taps
    small = dbl * (n_tok + 8) * cp * 4                   # koff + biases
    scratch = (rows + 2 * pad_rows) * cp * 4             # padded-v scratch
    temps = 6 * rows * cp * 4
    return x_block + out_block + weights + taps + small + scratch + temps


def _pick_windows_per_step(batch, tokens, cp, ksq, pad_rows, x_bytes,
                           budget, row_align):
    """Largest divisor TB of `batch` whose working set fits `budget`, with the
    grid kept >= 2 steps (both TensorCores busy) and sublane-aligned row blocks
    preferred."""
    divs = [d for d in range(1, batch + 1) if batch % d == 0]
    cap = max(1, batch // 2)
    cands = [d for d in divs if d <= cap] or [1]
    fit = [d for d in cands
           if _vmem_need_bytes(d * tokens, tokens, cp, ksq, pad_rows, x_bytes)
           <= budget]
    if not fit:
        fit = [min(cands)]
    aligned = [d for d in fit if (d * tokens) % row_align == 0]
    return max(aligned) if aligned else max(fit)


def simplified_linear_attention(x, params, *, num_heads, kernel_size,
                                windows_per_step=None,
                                compute_dtype=jnp.bfloat16,
                                interpret=False):
    """compute_dtype affects MXU operands only; accumulation and elementwise math
    stay float32.  bf16 is the default (all TPU MXUs are bf16-native)."""
    B, N, C = x.shape
    assert C % num_heads == 0
    head_dim = C // num_heads
    num = int(round(N ** 0.5))
    assert num * num == N, "square windows assumed (matches int(N**0.5) in the module)"
    pad = kernel_size // 2
    ksq = kernel_size * kernel_size
    f32 = jnp.float32

    CP = max(128, _round_up(C, 128))                  # lane-dense channel axis
    x_bytes = jnp.dtype(compute_dtype).itemsize

    # per-tap flat token shift + validity mask (zero padding of the KxK SAME conv)
    shifts = []
    valid = np.zeros((ksq, N), np.float32)
    for di in range(kernel_size):
        for dj in range(kernel_size):
            off = di * kernel_size + dj
            sr, sc = di - pad, dj - pad
            shifts.append(sr * num + sc)
            for r in range(num):
                for c in range(num):
                    if 0 <= r + sr < num and 0 <= c + sc < num:
                        valid[off, r * num + c] = 1.0
    shifts = tuple(shifts)
    pad_rows = _round_up(pad * num + pad, 8)
    # padding must cover every tap shift, otherwise unmasked neighbor-window reads
    assert pad_rows >= max(abs(s) for s in shifts)

    # VMEM-aware choice of windows per grid step + explicit scoped-VMEM limit
    vmem_cap = _vmem_capacity_bytes()
    TB = windows_per_step or _pick_windows_per_step(
        B, N, CP, ksq, pad_rows, x_bytes,
        budget=int(vmem_cap * 0.7),
        row_align=(16 if x_bytes < 4 else 8))
    assert B % TB == 0
    TBN = TB * N
    need = _vmem_need_bytes(TBN, N, CP, ksq, pad_rows, x_bytes)
    vmem_limit = int(min(vmem_cap * 0.9, max(need * 3 // 2, 32 << 20)))

    def padw(a, rows, cols):  # zero-pad a 2-D param to (rows, cols)
        a = jnp.asarray(a, f32)
        return jnp.pad(a, ((0, rows - a.shape[0]), (0, cols - a.shape[1])))

    # pre-split qkv projection weights (zero-padded to CP lanes)
    w_qkv = jnp.asarray(params["w_qkv"], f32)
    b_qkv = jnp.asarray(params["b_qkv"], f32)
    wq = padw(w_qkv[:, :C], CP, CP).astype(compute_dtype)
    wk = padw(w_qkv[:, C:2 * C], CP, CP).astype(compute_dtype)
    wv = padw(w_qkv[:, 2 * C:], CP, CP).astype(compute_dtype)
    w_proj_f32 = jnp.asarray(params["w_proj"], f32)
    wproj = padw(w_proj_f32, CP, CP).astype(compute_dtype)

    bq = padw(b_qkv[:C].reshape(1, C), 1, CP)
    bv = padw(b_qkv[2 * C:].reshape(1, C), 1, CP)
    # k bias + positional encoding, per window (N, CP) -- not TB-tiled
    koff = padw(b_qkv[C:2 * C].reshape(1, C)
                + jnp.asarray(params["pos"], f32).reshape(N, C), N, CP)

    # depthwise conv: per-tap per-channel weight (head-tiled, channel-padded),
    # fused with the per-token validity mask at per-window size (ksq, N, CP).
    w_dwc = jnp.asarray(params["w_dwc"], f32).reshape(head_dim, ksq).T     # (ksq, hd)
    w_dwc = jnp.tile(w_dwc, (1, num_heads))                                # (ksq, C)
    w_dwc = jnp.pad(w_dwc, ((0, 0), (0, CP - C)))                          # (ksq, CP)
    vm = jnp.asarray(valid)[:, :, None] * w_dwc[:, None, :]                # (ksq, N, CP)

    # fold the dwc bias into the projection bias (exact):
    # (attn + conv + b_dwc) @ Wp + bp == (attn + conv) @ Wp + (b_dwc @ Wp + bp)
    b_dwc_t = jnp.tile(jnp.asarray(params["b_dwc"], f32), num_heads).reshape(1, C)
    bproj_eff = padw(jnp.asarray(params["b_proj"], f32).reshape(1, C)
                     + b_dwc_t @ w_proj_f32, 1, CP)

    # head block-diagonal 0/1 mask (padded channels form their own inert blocks)
    hid = np.arange(CP) // head_dim
    blk = jnp.asarray((hid[:, None] == hid[None, :]).astype(np.float32))

    x_flat = jnp.pad(x.reshape(B * N, C),
                     ((0, 0), (0, CP - C))).astype(compute_dtype)

    kern = functools.partial(_sla_kernel, win_tokens=N, shifts=shifts,
                             pad_rows=pad_rows, mxu_dtype=compute_dtype)

    const2 = lambda b: (0, 0)
    cost = pl.CostEstimate(
        flops=int(14 * B * N * CP * CP + 2 * ksq * B * N * CP),
        transcendentals=int(B * N * CP),
        bytes_accessed=int(x_bytes * B * N * CP + 4 * B * N * CP
                           + (4 * x_bytes + 4) * CP * CP
                           + 4 * ksq * N * CP + 4 * (N + 4) * CP),
    )

    out_flat = pl.pallas_call(
        kern,
        out_shape=jax.ShapeDtypeStruct((B * N, CP), jnp.float32),
        grid=(B // TB,),
        in_specs=[
            pl.BlockSpec((TBN, CP), lambda b: (b, 0)),          # x rows (TB windows)
            pl.BlockSpec((CP, CP), const2),                     # Wq
            pl.BlockSpec((CP, CP), const2),                     # Wk
            pl.BlockSpec((CP, CP), const2),                     # Wv
            pl.BlockSpec((1, CP), const2),                      # bq
            pl.BlockSpec((N, CP), const2),                      # bk + positional encoding
            pl.BlockSpec((1, CP), const2),                      # bv
            pl.BlockSpec((CP, CP), const2),                     # head block-diag mask
            pl.BlockSpec((ksq, N, CP), lambda b: (0, 0, 0)),    # conv taps (mask * weight)
            pl.BlockSpec((CP, CP), const2),                     # Wproj
            pl.BlockSpec((1, CP), const2),                      # bproj (+ folded dwc bias)
        ],
        out_specs=pl.BlockSpec((TBN, CP), lambda b: (b, 0)),
        scratch_shapes=[pltpu.VMEM((TBN + 2 * pad_rows, CP), jnp.float32)],
        compiler_params=pltpu.CompilerParams(
            dimension_semantics=("parallel",),
            vmem_limit_bytes=vmem_limit),
        cost_estimate=cost,
        interpret=interpret,
    )(x_flat, wq, wk, wv, bq, koff, bv, blk, vm, wproj, bproj_eff)

    return out_flat[:, :C].reshape(B, N, C)


def _reference(x, params, *, num_heads, kernel_size):
    """Pure-JAX re-implementation of the PyTorch forward (correctness check)."""
    B, N, C = x.shape
    hd = C // num_heads
    qkv = x @ params["w_qkv"] + params["b_qkv"]
    q, k, v = qkv[..., :C], qkv[..., C:2 * C], qkv[..., 2 * C:]
    k = k + params["pos"]
    q = jax.nn.relu(q)
    k = jax.nn.relu(k)

    def to_heads(t):  # 'b n (h c) -> (b h) n c'
        return t.reshape(B, N, num_heads, hd).transpose(0, 2, 1, 3).reshape(B * num_heads, N, hd)

    q, k, v = to_heads(q), to_heads(k), to_heads(v)
    i = j = N
    c = d = hd
    z = 1.0 / (jnp.einsum('bic,bc->bi', q, k.sum(axis=1)) + 1e-6)
    if i * j * (c + d) > c * d * (i + j):
        kv = jnp.einsum('bjc,bjd->bcd', k, v)
        xo = jnp.einsum('bic,bcd,bi->bid', q, kv, z)
    else:
        qk = jnp.einsum('bic,bjc->bij', q, k)
        xo = jnp.einsum('bij,bjd,bi->bid', qk, v, z)

    num = int(N ** 0.5)
    fm = v.reshape(B * num_heads, num, num, hd).transpose(0, 3, 1, 2)
    w = params["w_dwc"].reshape(hd, 1, kernel_size, kernel_size)
    conv = jax.lax.conv_general_dilated(fm, w, window_strides=(1, 1),
                                        padding="SAME", feature_group_count=hd)
    conv = conv + params["b_dwc"].reshape(1, hd, 1, 1)
    fm_out = conv.transpose(0, 2, 3, 1).reshape(B * num_heads, N, hd)
    xo = xo + fm_out
    xo = xo.reshape(B, num_heads, N, hd).transpose(0, 2, 1, 3).reshape(B, N, C)
    return xo @ params["w_proj"] + params["b_proj"]


if __name__ == "__main__":
    key = jax.random.PRNGKey(0)
    B, num_heads, kernel_size = 2, 4, 5
    window = (4, 4)
    N = window[0] * window[1]
    C = 32
    head_dim = C // num_heads

    ks = jax.random.split(key, 8)
    s = 0.1
    params = {
        "w_qkv": jax.random.normal(ks[0], (C, 3 * C), jnp.float32) * s,
        "b_qkv": jax.random.normal(ks[1], (3 * C,), jnp.float32) * s,
        "pos": jax.random.normal(ks[2], (N, C), jnp.float32) * s,
        "w_dwc": jax.random.normal(ks[3], (head_dim, 1, kernel_size, kernel_size), jnp.float32) * s,
        "b_dwc": jax.random.normal(ks[4], (head_dim,), jnp.float32) * s,
        "w_proj": jax.random.normal(ks[5], (C, C), jnp.float32) * s,
        "b_proj": jax.random.normal(ks[6], (C,), jnp.float32) * s,
    }
    x = jax.random.normal(ks[7], (B, N, C), jnp.float32)

    ref = _reference(x, params, num_heads=num_heads, kernel_size=kernel_size)

    # f32 MXU operands: tight tolerance (covers pl.reciprocal(approx=True) and
    # the reordered contractions).
    out_f32 = simplified_linear_attention(x, params, num_heads=num_heads,
                                          kernel_size=kernel_size,
                                          compute_dtype=jnp.float32)
    out_f32 = jax.block_until_ready(out_f32)
    np.testing.assert_allclose(np.asarray(out_f32), np.asarray(ref),
                               rtol=5e-3, atol=2e-3)

    # default path: bf16 MXU operands, f32 accumulation -> relaxed tolerance.
    out_bf16 = simplified_linear_attention(x, params, num_heads=num_heads,
                                           kernel_size=kernel_size)
    out_bf16 = jax.block_until_ready(out_bf16)
    np.testing.assert_allclose(np.asarray(out_bf16), np.asarray(ref),
                               rtol=2e-2, atol=2e-2)

    print("KERNEL_OK")
</pallas_src>

<mosaic_0001>
module attributes {stable_mosaic.version = 11 : i64} {
  func.func @_sla_kernel(%arg0: i32, %arg1: memref<16x128xf32, #tpu.memory_space<vmem>>, %arg2: memref<128x128xf32, #tpu.memory_space<vmem>>, %arg3: memref<128x128xf32, #tpu.memory_space<vmem>>, %arg4: memref<128x128xf32, #tpu.memory_space<vmem>>, %arg5: memref<1x128xf32, #tpu.memory_space<vmem>>, %arg6: memref<16x128xf32, #tpu.memory_space<vmem>>, %arg7: memref<1x128xf32, #tpu.memory_space<vmem>>, %arg8: memref<128x128xf32, #tpu.memory_space<vmem>>, %arg9: memref<25x16x128xf32, #tpu.memory_space<vmem>>, %arg10: memref<128x128xf32, #tpu.memory_space<vmem>>, %arg11: memref<1x128xf32, #tpu.memory_space<vmem>>, %arg12: memref<16x128xf32, #tpu.memory_space<vmem>>, %arg13: memref<48x128xf32, #tpu.memory_space<vmem>>) attributes {dimension_semantics = [#tpu.dimension_semantics<parallel>], iteration_bounds = array<i64: 2>, scalar_prefetch = 0 : i64, scratch_operands = 1 : i64, tpu.core_type = #tpu.core_type<tc>, window_params = [{transform_indices = @transform_0, window_bounds = array<i64: 16, 128>}, {pipeline_mode = #tpu.pipeline_mode<synchronous>, transform_indices = @transform_1, window_bounds = array<i64: 128, 128>}, {pipeline_mode = #tpu.pipeline_mode<synchronous>, transform_indices = @transform_2, window_bounds = array<i64: 128, 128>}, {pipeline_mode = #tpu.pipeline_mode<synchronous>, transform_indices = @transform_3, window_bounds = array<i64: 128, 128>}, {pipeline_mode = #tpu.pipeline_mode<synchronous>, transform_indices = @transform_4, window_bounds = array<i64: 1, 128>}, {pipeline_mode = #tpu.pipeline_mode<synchronous>, transform_indices = @transform_5, window_bounds = array<i64: 16, 128>}, {pipeline_mode = #tpu.pipeline_mode<synchronous>, transform_indices = @transform_6, window_bounds = array<i64: 1, 128>}, {pipeline_mode = #tpu.pipeline_mode<synchronous>, transform_indices = @transform_7, window_bounds = array<i64: 128, 128>}, {pipeline_mode = #tpu.pipeline_mode<synchronous>, transform_indices = @transform_8, window_bounds = array<i64: 25, 16, 128>}, {pipeline_mode = #tpu.pipeline_mode<synchronous>, transform_indices = @transform_9, window_bounds = array<i64: 128, 128>}, {pipeline_mode = #tpu.pipeline_mode<synchronous>, transform_indices = @transform_10, window_bounds = array<i64: 1, 128>}, {transform_indices = @transform_11, window_bounds = array<i64: 16, 128>}]} {
    %c0 = arith.constant 0 : index
    %c0_0 = arith.constant 0 : index
    %0 = vector.load %arg1[%c0, %c0_0] : memref<16x128xf32, #tpu.memory_space<vmem>>, vector<16x128xf32>
    %c0_1 = arith.constant 0 : index
    %c0_2 = arith.constant 0 : index
    %1 = vector.load %arg2[%c0_1, %c0_2] : memref<128x128xf32, #tpu.memory_space<vmem>>, vector<128x128xf32>
    %cst = arith.constant dense<0.000000e+00> : vector<16x128xf32>
    %2 = tpu.matmul %0, %1, %cst {dimension_numbers = #tpu.dot_dimension_numbers<[1], [0], [0], [1], [0, 0, 1, 1], [], []>} : vector<16x128xf32>, vector<128x128xf32>, vector<16x128xf32> -> vector<16x128xf32>
    %c0_3 = arith.constant 0 : index
    %c0_4 = arith.constant 0 : index
    %3 = vector.load %arg5[%c0_3, %c0_4] : memref<1x128xf32, #tpu.memory_space<vmem>>, vector<1x128xf32>
    %4 = vector.broadcast %3 : vector<1x128xf32> to vector<16x128xf32>
    %5 = arith.addf %2, %4 : vector<16x128xf32>
    %cst_5 = arith.constant 0.000000e+00 : f32
    %6 = vector.broadcast %cst_5 : f32 to vector<16x128xf32>
    %7 = arith.maximumf %5, %6 : vector<16x128xf32>
    %c0_6 = arith.constant 0 : index
    %c0_7 = arith.constant 0 : index
    %8 = vector.load %arg3[%c0_6, %c0_7] : memref<128x128xf32, #tpu.memory_space<vmem>>, vector<128x128xf32>
    %cst_8 = arith.constant dense<0.000000e+00> : vector<16x128xf32>
    %9 = tpu.matmul %0, %8, %cst_8 {dimension_numbers = #tpu.dot_dimension_numbers<[1], [0], [0], [1], [0, 0, 1, 1], [], []>} : vector<16x128xf32>, vector<128x128xf32>, vector<16x128xf32> -> vector<16x128xf32>
    %c0_9 = arith.constant 0 : index
    %c0_10 = arith.constant 0 : index
    %10 = vector.load %arg4[%c0_9, %c0_10] : memref<128x128xf32, #tpu.memory_space<vmem>>, vector<128x128xf32>
    %cst_11 = arith.constant dense<0.000000e+00> : vector<16x128xf32>
    %11 = tpu.matmul %0, %10, %cst_11 {dimension_numbers = #tpu.dot_dimension_numbers<[1], [0], [0], [1], [0, 0, 1, 1], [], []>} : vector<16x128xf32>, vector<128x128xf32>, vector<16x128xf32> -> vector<16x128xf32>
    %c0_12 = arith.constant 0 : index
    %c0_13 = arith.constant 0 : index
    %12 = vector.load %arg7[%c0_12, %c0_13] : memref<1x128xf32, #tpu.memory_space<vmem>>, vector<1x128xf32>
    %13 = vector.broadcast %12 : vector<1x128xf32> to vector<16x128xf32>
    %14 = arith.addf %11, %13 : vector<16x128xf32>
    %cst_14 = arith.constant 0.000000e+00 : f32
    %15 = vector.broadcast %cst_14 : f32 to vector<16x128xf32>
    %c0_15 = arith.constant 0 : index
    %c0_16 = arith.constant 0 : index
    %16 = vector.load %arg13[%c0_15, %c0_16] : memref<48x128xf32, #tpu.memory_space<vmem>>, vector<16x128xf32>
    tpu.vector_store %arg13[%c0_15, %c0_16], %15 {strides = array<i32>} : memref<48x128xf32, #tpu.memory_space<vmem>>, vector<16x128xf32>,
    %c16 = arith.constant 16 : index
    %c0_17 = arith.constant 0 : index
    %17 = vector.load %arg13[%c16, %c0_17] : memref<48x128xf32, #tpu.memory_space<vmem>>, vector<16x128xf32>
    tpu.vector_store %arg13[%c16, %c0_17], %14 {strides = array<i32>} : memref<48x128xf32, #tpu.memory_space<vmem>>, vector<16x128xf32>,
    %cst_18 = arith.constant 0.000000e+00 : f32
    %18 = vector.broadcast %cst_18 : f32 to vector<16x128xf32>
    %c32 = arith.constant 32 : index
    %c0_19 = arith.constant 0 : index
    %19 = vector.load %arg13[%c32, %c0_19] : memref<48x128xf32, #tpu.memory_space<vmem>>, vector<16x128xf32>
    tpu.vector_store %arg13[%c32, %c0_19], %18 {strides = array<i32>} : memref<48x128xf32, #tpu.memory_space<vmem>>, vector<16x128xf32>,
    %c0_20 = arith.constant 0 : index
    %c0_21 = arith.constant 0 : index
    %20 = vector.load %arg8[%c0_20, %c0_21] : memref<128x128xf32, #tpu.memory_space<vmem>>, vector<128x128xf32>
    %c0_22 = arith.constant 0 : index
    %c0_23 = arith.constant 0 : index
    %21 = vector.load %arg6[%c0_22, %c0_23] : memref<16x128xf32, #tpu.memory_space<vmem>>, vector<16x128xf32>
    %22 = vector.extract_strided_slice %7 {offsets = [0, 0], sizes = [16, 128], strides = [1, 1]} : vector<16x128xf32> to vector<16x128xf32>
    %23 = vector.extract_strided_slice %14 {offsets = [0, 0], sizes = [16, 128], strides = [1, 1]} : vector<16x128xf32> to vector<16x128xf32>
    %24 = vector.extract_strided_slice %9 {offsets = [0, 0], sizes = [16, 128], strides = [1, 1]} : vector<16x128xf32> to vector<16x128xf32>
    %25 = arith.addf %24, %21 : vector<16x128xf32>
    %cst_24 = arith.constant 0.000000e+00 : f32
    %26 = vector.broadcast %cst_24 : f32 to vector<16x128xf32>
    %27 = arith.maximumf %25, %26 : vector<16x128xf32>
    %cst_25 = arith.constant dense<0.000000e+00> : vector<128xf32>
    %28 = vector.multi_reduction <add>, %27, %cst_25 [0] : vector<16x128xf32> to vector<128xf32>
    %29 = vector.shape_cast %28 : vector<128xf32> to vector<1x128xf32>
    %cst_26 = arith.constant dense<0.000000e+00> : vector<128x128xf32>
    %30 = tpu.matmul %27, %23, %cst_26 {dimension_numbers = #tpu.dot_dimension_numbers<[0], [0], [1], [1], [0, 1, 1, 1], [], []>} : vector<16x128xf32>, vector<16x128xf32>, vector<128x128xf32> -> vector<128x128xf32>
    %31 = arith.mulf %30, %20 : vector<128x128xf32>
    %cst_27 = arith.constant dense<0.000000e+00> : vector<16x128xf32>
    %32 = tpu.matmul %22, %31, %cst_27 {dimension_numbers = #tpu.dot_dimension_numbers<[1], [0], [0], [1], [0, 0, 1, 1], [], []>} : vector<16x128xf32>, vector<128x128xf32>, vector<16x128xf32> -> vector<16x128xf32>
    %33 = vector.broadcast %29 : vector<1x128xf32> to vector<16x128xf32>
    %34 = arith.mulf %22, %33 : vector<16x128xf32>
    %cst_28 = arith.constant dense<0.000000e+00> : vector<16x128xf32>
    %35 = tpu.matmul %34, %20, %cst_28 {dimension_numbers = #tpu.dot_dimension_numbers<[1], [0], [0], [1], [0, 0, 1, 1], [], []>} : vector<16x128xf32>, vector<128x128xf32>, vector<16x128xf32> -> vector<16x128xf32>
    %cst_29 = arith.constant 9.99999997E-7 : f32
    %36 = vector.broadcast %cst_29 : f32 to vector<16x128xf32>
    %37 = arith.addf %35, %36 : vector<16x128xf32>
    %38 = tpu.reciprocal %37 {approx = true} : vector<16x128xf32> -> vector<16x128xf32>
    %39 = arith.mulf %32, %38 : vector<16x128xf32>
    %c6 = arith.constant 6 : index
    %c0_30 = arith.constant 0 : index
    %40 = vector.load %arg13[%c6, %c0_30] : memref<48x128xf32, #tpu.memory_space<vmem>>, vector<16x128xf32>
    %c0_31 = arith.constant 0 : index
    %c0_32 = arith.constant 0 : index
    %c0_33 = arith.constant 0 : index
    %41 = vector.load %arg9[%c0_31, %c0_32, %c0_33] : memref<25x16x128xf32, #tpu.memory_space<vmem>>, vector<1x16x128xf32>
    %42 = vector.shape_cast %41 : vector<1x16x128xf32> to vector<16x128xf32>
    %43 = arith.mulf %40, %42 : vector<16x128xf32>
    %c7 = arith.constant 7 : index
    %c0_34 = arith.constant 0 : index
    %44 = vector.load %arg13[%c7, %c0_34] : memref<48x128xf32, #tpu.memory_space<vmem>>, vector<16x128xf32>
    %c1 = arith.constant 1 : index
    %c0_35 = arith.constant 0 : index
    %c0_36 = arith.constant 0 : index
    %45 = vector.load %arg9[%c1, %c0_35, %c0_36] : memref<25x16x128xf32, #tpu.memory_space<vmem>>, vector<1x16x128xf32>
    %46 = vector.shape_cast %45 : vector<1x16x128xf32> to vector<16x128xf32>
    %47 = arith.mulf %44, %46 : vector<16x128xf32>
    %48 = arith.addf %43, %47 : vector<16x128xf32>
    %c8 = arith.constant 8 : index
    %c0_37 = arith.constant 0 : index
    %49 = vector.load %arg13[%c8, %c0_37] : memref<48x128xf32, #tpu.memory_space<vmem>>, vector<16x128xf32>
    %c2 = arith.constant 2 : index
    %c0_38 = arith.constant 0 : index
    %c0_39 = arith.constant 0 : index
    %50 = vector.load %arg9[%c2, %c0_38, %c0_39] : memref<25x16x128xf32, #tpu.memory_space<vmem>>, vector<1x16x128xf32>
    %51 = vector.shape_cast %50 : vector<1x16x128xf32> to vector<16x128xf32>
    %52 = arith.mulf %49, %51 : vector<16x128xf32>
    %53 = arith.addf %48, %52 : vector<16x128xf32>
    %c9 = arith.constant 9 : index
    %c0_40 = arith.constant 0 : index
    %54 = vector.load %arg13[%c9, %c0_40] : memref<48x128xf32, #tpu.memory_space<vmem>>, vector<16x128xf32>
    %c3 = arith.constant 3 : index
    %c0_41 = arith.constant 0 : index
    %c0_42 = arith.constant 0 : index
    %55 = vector.load %arg9[%c3, %c0_41, %c0_42] : memref<25x16x128xf32, #tpu.memory_space<vmem>>, vector<1x16x128xf32>
    %56 = vector.shape_cast %55 : vector<1x16x128xf32> to vector<16x128xf32>
    %57 = arith.mulf %54, %56 : vector<16x128xf32>
    %58 = arith.addf %53, %57 : vector<16x128xf32>
    %c10 = arith.constant 10 : index
    %c0_43 = arith.constant 0 : index
    %59 = vector.load %arg13[%c10, %c0_43] : memref<48x128xf32, #tpu.memory_space<vmem>>, vector<16x128xf32>
    %c4 = arith.constant 4 : index
    %c0_44 = arith.constant 0 : index
    %c0_45 = arith.constant 0 : index
    %60 = vector.load %arg9[%c4, %c0_44, %c0_45] : memref<25x16x128xf32, #tpu.memory_space<vmem>>, vector<1x16x128xf32>
    %61 = vector.shape_cast %60 : vector<1x16x128xf32> to vector<16x128xf32>
    %62 = arith.mulf %59, %61 : vector<16x128xf32>
    %63 = arith.addf %58, %62 : vector<16x128xf32>
    %c10_46 = arith.constant 10 : index
    %c0_47 = arith.constant 0 : index
    %64 = vector.load %arg13[%c10_46, %c0_47] : memref<48x128xf32, #tpu.memory_space<vmem>>, vector<16x128xf32>
    %c5 = arith.constant 5 : index
    %c0_48 = arith.constant 0 : index
    %c0_49 = arith.constant 0 : index
    %65 = vector.load %arg9[%c5, %c0_48, %c0_49] : memref<25x16x128xf32, #tpu.memory_space<vmem>>, vector<1x16x128xf32>
    %66 = vector.shape_cast %65 : vector<1x16x128xf32> to vector<16x128xf32>
    %67 = arith.mulf %64, %66 : vector<16x128xf32>
    %68 = arith.addf %63, %67 : vector<16x128xf32>
    %c11 = arith.constant 11 : index
    %c0_50 = arith.constant 0 : index
    %69 = vector.load %arg13[%c11, %c0_50] : memref<48x128xf32, #tpu.memory_space<vmem>>, vector<16x128xf32>
    %c6_51 = arith.constant 6 : index
    %c0_52 = arith.constant 0 : index
    %c0_53 = arith.constant 0 : index
    %70 = vector.load %arg9[%c6_51, %c0_52, %c0_53] : memref<25x16x128xf32, #tpu.memory_space<vmem>>, vector<1x16x128xf32>
    %71 = vector.shape_cast %70 : vector<1x16x128xf32> to vector<16x128xf32>
    %72 = arith.mulf %69, %71 : vector<16x128xf32>
    %73 = arith.addf %68, %72 : vector<16x128xf32>
    %c12 = arith.constant 12 : index
    %c0_54 = arith.constant 0 : index
    %74 = vector.load %arg13[%c12, %c0_54] : memref<48x128xf32, #tpu.memory_space<vmem>>, vector<16x128xf32>
    %c7_55 = arith.constant 7 : index
    %c0_56 = arith.constant 0 : index
    %c0_57 = arith.constant 0 : index
    %75 = vector.load %arg9[%c7_55, %c0_56, %c0_57] : memref<25x16x128xf32, #tpu.memory_space<vmem>>, vector<1x16x128xf32>
    %76 = vector.shape_cast %75 : vector<1x16x128xf32> to vector<16x128xf32>
    %77 = arith.mulf %74, %76 : vector<16x128xf32>
    %78 = arith.addf %73, %77 : vector<16x128xf32>
    %c13 = arith.constant 13 : index
    %c0_58 = arith.constant 0 : index
    %79 = vector.load %arg13[%c13, %c0_58] : memref<48x128xf32, #tpu.memory_space<vmem>>, vector<16x128xf32>
    %c8_59 = arith.constant 8 : index
    %c0_60 = arith.constant 0 : index
    %c0_61 = arith.constant 0 : index
    %80 = vector.load %arg9[%c8_59, %c0_60, %c0_61] : memref<25x16x128xf32, #tpu.memory_space<vmem>>, vector<1x16x128xf32>
    %81 = vector.shape_cast %80 : vector<1x16x128xf32> to vector<16x128xf32>
    %82 = arith.mulf %79, %81 : vector<16x128xf32>
    %83 = arith.addf %78, %82 : vector<16x128xf32>
    %c14 = arith.constant 14 : index
    %c0_62 = arith.constant 0 : index
    %84 = vector.load %arg13[%c14, %c0_62] : memref<48x128xf32, #tpu.memory_space<vmem>>, vector<16x128xf32>
    %c9_63 = arith.constant 9 : index
    %c0_64 = arith.constant 0 : index
    %c0_65 = arith.constant 0 : index
    %85 = vector.load %arg9[%c9_63, %c0_64, %c0_65] : memref<25x16x128xf32, #tpu.memory_space<vmem>>, vector<1x16x128xf32>
    %86 = vector.shape_cast %85 : vector<1x16x128xf32> to vector<16x128xf32>
    %87 = arith.mulf %84, %86 : vector<16x128xf32>
    %88 = arith.addf %83, %87 : vector<16x128xf32>
    %c14_66 = arith.constant 14 : index
    %c0_67 = arith.constant 0 : index
    %89 = vector.load %arg13[%c14_66, %c0_67] : memref<48x128xf32, #tpu.memory_space<vmem>>, vector<16x128xf32>
    %c10_68 = arith.constant 10 : index
    %c0_69 = arith.constant 0 : index
    %c0_70 = arith.constant 0 : index
    %90 = vector.load %arg9[%c10_68, %c0_69, %c0_70] : memref<25x16x128xf32, #tpu.memory_space<vmem>>, vector<1x16x128xf32>
    %91 = vector.shape_cast %90 : vector<1x16x128xf32> to vector<16x128xf32>
    %92 = arith.mulf %89, %91 : vector<16x128xf32>
    %93 = arith.addf %88, %92 : vector<16x128xf32>
    %c15 = arith.constant 15 : index
    %c0_71 = arith.constant 0 : index
    %94 = vector.load %arg13[%c15, %c0_71] : memref<48x128xf32, #tpu.memory_space<vmem>>, vector<16x128xf32>
    %c11_72 = arith.constant 11 : index
    %c0_73 = arith.constant 0 : index
    %c0_74 = arith.constant 0 : index
    %95 = vector.load %arg9[%c11_72, %c0_73, %c0_74] : memref<25x16x128xf32, #tpu.memory_space<vmem>>, vector<1x16x128xf32>
    %96 = vector.shape_cast %95 : vector<1x16x128xf32> to vector<16x128xf32>
    %97 = arith.mulf %94, %96 : vector<16x128xf32>
    %98 = arith.addf %93, %97 : vector<16x128xf32>
    %c16_75 = arith.constant 16 : index
    %c0_76 = arith.constant 0 : index
    %99 = vector.load %arg13[%c16_75, %c0_76] : memref<48x128xf32, #tpu.memory_space<vmem>>, vector<16x128xf32>
    %c12_77 = arith.constant 12 : index
    %c0_78 = arith.constant 0 : index
    %c0_79 = arith.constant 0 : index
    %100 = vector.load %arg9[%c12_77, %c0_78, %c0_79] : memref<25x16x128xf32, #tpu.memory_space<vmem>>, vector<1x16x128xf32>
    %101 = vector.shape_cast %100 : vector<1x16x128xf32> to vector<16x128xf32>
    %102 = arith.mulf %99, %101 : vector<16x128xf32>
    %103 = arith.addf %98, %102 : vector<16x128xf32>
    %c17 = arith.constant 17 : index
    %c0_80 = arith.constant 0 : index
    %104 = vector.load %arg13[%c17, %c0_80] : memref<48x128xf32, #tpu.memory_space<vmem>>, vector<16x128xf32>
    %c13_81 = arith.constant 13 : index
    %c0_82 = arith.constant 0 : index
    %c0_83 = arith.constant 0 : index
    %105 = vector.load %arg9[%c13_81, %c0_82, %c0_83] : memref<25x16x128xf32, #tpu.memory_space<vmem>>, vector<1x16x128xf32>
    %106 = vector.shape_cast %105 : vector<1x16x128xf32> to vector<16x128xf32>
    %107 = arith.mulf %104, %106 : vector<16x128xf32>
    %108 = arith.addf %103, %107 : vector<16x128xf32>
    %c18 = arith.constant 18 : index
    %c0_84 = arith.constant 0 : index
    %109 = vector.load %arg13[%c18, %c0_84] : memref<48x128xf32, #tpu.memory_space<vmem>>, vector<16x128xf32>
    %c14_85 = arith.constant 14 : index
    %c0_86 = arith.constant 0 : index
    %c0_87 = arith.constant 0 : index
    %110 = vector.load %arg9[%c14_85, %c0_86, %c0_87] : memref<25x16x128xf32, #tpu.memory_space<vmem>>, vector<1x16x128xf32>
    %111 = vector.shape_cast %110 : vector<1x16x128xf32> to vector<16x128xf32>
    %112 = arith.mulf %109, %111 : vector<16x128xf32>
    %113 = arith.addf %108, %112 : vector<16x128xf32>
    %c18_88 = arith.constant 18 : index
    %c0_89 = arith.constant 0 : index
    %114 = vector.load %arg13[%c18_88, %c0_89] : memref<48x128xf32, #tpu.memory_space<vmem>>, vector<16x128xf32>
    %c15_90 = arith.constant 15 : index
    %c0_91 = arith.constant 0 : index
    %c0_92 = arith.constant 0 : index
    %115 = vector.load %arg9[%c15_90, %c0_91, %c0_92] : memref<25x16x128xf32, #tpu.memory_space<vmem>>, vector<1x16x128xf32>
    %116 = vector.shape_cast %115 : vector<1x16x128xf32> to vector<16x128xf32>
    %117 = arith.mulf %114, %116 : vector<16x128xf32>
    %118 = arith.addf %113, %117 : vector<16x128xf32>
    %c19 = arith.constant 19 : index
    %c0_93 = arith.constant 0 : index
    %119 = vector.load %arg13[%c19, %c0_93] : memref<48x128xf32, #tpu.memory_space<vmem>>, vector<16x128xf32>
    %c16_94 = arith.constant 16 : index
    %c0_95 = arith.constant 0 : index
    %c0_96 = arith.constant 0 : index
    %120 = vector.load %arg9[%c16_94, %c0_95, %c0_96] : memref<25x16x128xf32, #tpu.memory_space<vmem>>, vector<1x16x128xf32>
    %121 = vector.shape_cast %120 : vector<1x16x128xf32> to vector<16x128xf32>
    %122 = arith.mulf %119, %121 : vector<16x128xf32>
    %123 = arith.addf %118, %122 : vector<16x128xf32>
    %c20 = arith.constant 20 : index
    %c0_97 = arith.constant 0 : index
    %124 = vector.load %arg13[%c20, %c0_97] : memref<48x128xf32, #tpu.memory_space<vmem>>, vector<16x128xf32>
    %c17_98 = arith.constant 17 : index
    %c0_99 = arith.constant 0 : index
    %c0_100 = arith.constant 0 : index
    %125 = vector.load %arg9[%c17_98, %c0_99, %c0_100] : memref<25x16x128xf32, #tpu.memory_space<vmem>>, vector<1x16x128xf32>
    %126 = vector.shape_cast %125 : vector<1x16x128xf32> to vector<16x128xf32>
    %127 = arith.mulf %124, %126 : vector<16x128xf32>
    %128 = arith.addf %123, %127 : vector<16x128xf32>
    %c21 = arith.constant 21 : index
    %c0_101 = arith.constant 0 : index
    %129 = vector.load %arg13[%c21, %c0_101] : memref<48x128xf32, #tpu.memory_space<vmem>>, vector<16x128xf32>
    %c18_102 = arith.constant 18 : index
    %c0_103 = arith.constant 0 : index
    %c0_104 = arith.constant 0 : index
    %130 = vector.load %arg9[%c18_102, %c0_103, %c0_104] : memref<25x16x128xf32, #tpu.memory_space<vmem>>, vector<1x16x128xf32>
    %131 = vector.shape_cast %130 : vector<1x16x128xf32> to vector<16x128xf32>
    %132 = arith.mulf %129, %131 : vector<16x128xf32>
    %133 = arith.addf %128, %132 : vector<16x128xf32>
    %c22 = arith.constant 22 : index
    %c0_105 = arith.constant 0 : index
    %134 = vector.load %arg13[%c22, %c0_105] : memref<48x128xf32, #tpu.memory_space<vmem>>, vector<16x128xf32>
    %c19_106 = arith.constant 19 : index
    %c0_107 = arith.constant 0 : index
    %c0_108 = arith.constant 0 : index
    %135 = vector.load %arg9[%c19_106, %c0_107, %c0_108] : memref<25x16x128xf32, #tpu.memory_space<vmem>>, vector<1x16x128xf32>
    %136 = vector.shape_cast %135 : vector<1x16x128xf32> to vector<16x128xf32>
    %137 = arith.mulf %134, %136 : vector<16x128xf32>
    %138 = arith.addf %133, %137 : vector<16x128xf32>
    %c22_109 = arith.constant 22 : index
    %c0_110 = arith.constant 0 : index
    %139 = vector.load %arg13[%c22_109, %c0_110] : memref<48x128xf32, #tpu.memory_space<vmem>>, vector<16x128xf32>
    %c20_111 = arith.constant 20 : index
    %c0_112 = arith.constant 0 : index
    %c0_113 = arith.constant 0 : index
    %140 = vector.load %arg9[%c20_111, %c0_112, %c0_113] : memref<25x16x128xf32, #tpu.memory_space<vmem>>, vector<1x16x128xf32>
    %141 = vector.shape_cast %140 : vector<1x16x128xf32> to vector<16x128xf32>
    %142 = arith.mulf %139, %141 : vector<16x128xf32>
    %143 = arith.addf %138, %142 : vector<16x128xf32>
    %c23 = arith.constant 23 : index
    %c0_114 = arith.constant 0 : index
    %144 = vector.load %arg13[%c23, %c0_114] : memref<48x128xf32, #tpu.memory_space<vmem>>, vector<16x128xf32>
    %c21_115 = arith.constant 21 : index
    %c0_116 = arith.constant 0 : index
    %c0_117 = arith.constant 0 : index
    %145 = vector.load %arg9[%c21_115, %c0_116, %c0_117] : memref<25x16x128xf32, #tpu.memory_space<vmem>>, vector<1x16x128xf32>
    %146 = vector.shape_cast %145 : vector<1x16x128xf32> to vector<16x128xf32>
    %147 = arith.mulf %144, %146 : vector<16x128xf32>
    %148 = arith.addf %143, %147 : vector<16x128xf32>
    %c24 = arith.constant 24 : index
    %c0_118 = arith.constant 0 : index
    %149 = vector.load %arg13[%c24, %c0_118] : memref<48x128xf32, #tpu.memory_space<vmem>>, vector<16x128xf32>
    %c22_119 = arith.constant 22 : index
    %c0_120 = arith.constant 0 : index
    %c0_121 = arith.constant 0 : index
    %150 = vector.load %arg9[%c22_119, %c0_120, %c0_121] : memref<25x16x128xf32, #tpu.memory_space<vmem>>, vector<1x16x128xf32>
    %151 = vector.shape_cast %150 : vector<1x16x128xf32> to vector<16x128xf32>
    %152 = arith.mulf %149, %151 : vector<16x128xf32>
    %153 = arith.addf %148, %152 : vector<16x128xf32>
    %c25 = arith.constant 25 : index
    %c0_122 = arith.constant 0 : index
    %154 = vector.load %arg13[%c25, %c0_122] : memref<48x128xf32, #tpu.memory_space<vmem>>, vector<16x128xf32>
    %c23_123 = arith.constant 23 : index
    %c0_124 = arith.constant 0 : index
    %c0_125 = arith.constant 0 : index
    %155 = vector.load %arg9[%c23_123, %c0_124, %c0_125] : memref<25x16x128xf32, #tpu.memory_space<vmem>>, vector<1x16x128xf32>
    %156 = vector.shape_cast %155 : vector<1x16x128xf32> to vector<16x128xf32>
    %157 = arith.mulf %154, %156 : vector<16x128xf32>
    %158 = arith.addf %153, %157 : vector<16x128xf32>
    %c26 = arith.constant 26 : index
    %c0_126 = arith.constant 0 : index
    %159 = vector.load %arg13[%c26, %c0_126] : memref<48x128xf32, #tpu.memory_space<vmem>>, vector<16x128xf32>
    %c24_127 = arith.constant 24 : index
    %c0_128 = arith.constant 0 : index
    %c0_129 = arith.constant 0 : index
    %160 = vector.load %arg9[%c24_127, %c0_128, %c0_129] : memref<25x16x128xf32, #tpu.memory_space<vmem>>, vector<1x16x128xf32>
    %161 = vector.shape_cast %160 : vector<1x16x128xf32> to vector<16x128xf32>
    %162 = arith.mulf %159, %161 : vector<16x128xf32>
    %163 = arith.addf %158, %162 : vector<16x128xf32>
    %164 = arith.addf %39, %163 : vector<16x128xf32>
    %c0_130 = arith.constant 0 : index
    %c0_131 = arith.constant 0 : index
    %165 = vector.load %arg12[%c0_130, %c0_131] : memref<16x128xf32, #tpu.memory_space<vmem>>, vector<16x128xf32>
    tpu.vector_store %arg12[%c0_130, %c0_131], %164 {strides = array<i32>} : memref<16x128xf32, #tpu.memory_space<vmem>>, vector<16x128xf32>,
    %c0_132 = arith.constant 0 : index
    %c0_133 = arith.constant 0 : index
    %166 = vector.load %arg12[%c0_132, %c0_133] : memref<16x128xf32, #tpu.memory_space<vmem>>, vector<16x128xf32>
    %c0_134 = arith.constant 0 : index
    %c0_135 = arith.constant 0 : index
    %167 = vector.load %arg10[%c0_134, %c0_135] : memref<128x128xf32, #tpu.memory_space<vmem>>, vector<128x128xf32>
    %cst_136 = arith.constant dense<0.000000e+00> : vector<16x128xf32>
    %168 = tpu.matmul %166, %167, %cst_136 {dimension_numbers = #tpu.dot_dimension_numbers<[1], [0], [0], [1], [0, 0, 1, 1], [], []>} : vector<16x128xf32>, vector<128x128xf32>, vector<16x128xf32> -> vector<16x128xf32>
    %c0_137 = arith.constant 0 : index
    %c0_138 = arith.constant 0 : index
    %169 = vector.load %arg11[%c0_137, %c0_138] : memref<1x128xf32, #tpu.memory_space<vmem>>, vector<1x128xf32>
    %170 = vector.broadcast %169 : vector<1x128xf32> to vector<16x128xf32>
    %171 = arith.addf %168, %170 : vector<16x128xf32>
    %c0_139 = arith.constant 0 : index
    %c0_140 = arith.constant 0 : index
    %172 = vector.load %arg12[%c0_139, %c0_140] : memref<16x128xf32, #tpu.memory_space<vmem>>, vector<16x128xf32>
    tpu.vector_store %arg12[%c0_139, %c0_140], %171 {strides = array<i32>} : memref<16x128xf32, #tpu.memory_space<vmem>>, vector<16x128xf32>,
    return
  }
  func.func @transform_0(%arg0: i32) -> (i32, i32) {
    %c0_i32 = arith.constant 0 : i32
    %c0_i32_0 = arith.constant 0 : i32
    return %arg0, %c0_i32 : i32, i32
  }
  func.func @transform_1(%arg0: i32) -> (i32, i32) {
    %c0_i32 = arith.constant 0 : i32
    %c0_i32_0 = arith.constant 0 : i32
    %c0_i32_1 = arith.constant 0 : i32
    return %c0_i32, %c0_i32_0 : i32, i32
  }
  func.func @transform_2(%arg0: i32) -> (i32, i32) {
    %c0_i32 = arith.constant 0 : i32
    %c0_i32_0 = arith.constant 0 : i32
    %c0_i32_1 = arith.constant 0 : i32
    return %c0_i32, %c0_i32_0 : i32, i32
  }
  func.func @transform_3(%arg0: i32) -> (i32, i32) {
    %c0_i32 = arith.constant 0 : i32
    %c0_i32_0 = arith.constant 0 : i32
    %c0_i32_1 = arith.constant 0 : i32
    return %c0_i32, %c0_i32_0 : i32, i32
  }
  func.func @transform_4(%arg0: i32) -> (i32, i32) {
    %c0_i32 = arith.constant 0 : i32
    %c0_i32_0 = arith.constant 0 : i32
    %c0_i32_1 = arith.constant 0 : i32
    return %c0_i32, %c0_i32_0 : i32, i32
  }
  func.func @transform_5(%arg0: i32) -> (i32, i32) {
    %c0_i32 = arith.constant 0 : i32
    %c0_i32_0 = arith.constant 0 : i32
    %c0_i32_1 = arith.constant 0 : i32
    return %c0_i32, %c0_i32_0 : i32, i32
  }
  func.func @transform_6(%arg0: i32) -> (i32, i32) {
    %c0_i32 = arith.constant 0 : i32
    %c0_i32_0 = arith.constant 0 : i32
    %c0_i32_1 = arith.constant 0 : i32
    return %c0_i32, %c0_i32_0 : i32, i32
  }
  func.func @transform_7(%arg0: i32) -> (i32, i32) {
    %c0_i32 = arith.constant 0 : i32
    %c0_i32_0 = arith.constant 0 : i32
    %c0_i32_1 = arith.constant 0 : i32
    return %c0_i32, %c0_i32_0 : i32, i32
  }
  func.func @transform_8(%arg0: i32) -> (i32, i32, i32) {
    %c0_i32 = arith.constant 0 : i32
    %c0_i32_0 = arith.constant 0 : i32
    %c0_i32_1 = arith.constant 0 : i32
    %c0_i32_2 = arith.constant 0 : i32
    return %c0_i32, %c0_i32_0, %c0_i32_1 : i32, i32, i32
  }
  func.func @transform_9(%arg0: i32) -> (i32, i32) {
    %c0_i32 = arith.constant 0 : i32
    %c0_i32_0 = arith.constant 0 : i32
    %c0_i32_1 = arith.constant 0 : i32
    return %c0_i32, %c0_i32_0 : i32, i32
  }
  func.func @transform_10(%arg0: i32) -> (i32, i32) {
    %c0_i32 = arith.constant 0 : i32
    %c0_i32_0 = arith.constant 0 : i32
    %c0_i32_1 = arith.constant 0 : i32
    return %c0_i32, %c0_i32_0 : i32, i32
  }
  func.func @transform_11(%arg0: i32) -> (i32, i32) {
    %c0_i32 = arith.constant 0 : i32
    %c0_i32_0 = arith.constant 0 : i32
    return %arg0, %c0_i32 : i32, i32
  }
}

</mosaic_0001>

<bundles_post_ra>
// kernel: tpu_custom_call.1
= control target key start
LH: loop header
LB: loop body
LE: loop exit
PB: predicated region body
PF: predicated region fallthrough
CT: control target
= control target key end

     0   :  { %s3261_s0 = inlined_call_operand.hbm [shape: f32[32,128], index: 0, kind: input, shape index: {}]   ;;  %s3262_s1 = inlined_call_operand.hbm [shape: f32[128,128], index: 1, kind: input, shape index: {}]   ;;  %s3263_s2 = inlined_call_operand.hbm [shape: f32[128,128], index: 2, kind: input, shape index: {}]   ;;  %s3264_s3 = inlined_call_operand.hbm [shape: f32[128,128], index: 3, kind: input, shape index: {}]   ;;  %s3265_s4 = inlined_call_operand.vmem [shape: f32[1,128], index: 4, kind: input, shape index: {}]   ;;  %s3266_s5 = inlined_call_operand.vmem [shape: f32[16,128], index: 5, kind: input, shape index: {}]   ;;  %s3267_s6 = inlined_call_operand.vmem [shape: f32[1,128], index: 6, kind: input, shape index: {}]   ;;  %s3268_s7 = inlined_call_operand.hbm [shape: f32[128,128], index: 7, kind: input, shape index: {}]   ;;  %s3269_s8 = inlined_call_operand.hbm [shape: f32[25,16,128], index: 8, kind: input, shape index: {}]   ;;  %s3270_s9 = inlined_call_operand.hbm [shape: f32[128,128], index: 9, kind: input, shape index: {}]   ;;  %s3271_s10 = inlined_call_operand.vmem [shape: f32[1,128], index: 10, kind: input, shape index: {}]   ;;  %s3272_s11 = inlined_call_operand.hbm [shape: f32[32,128], index: 11, kind: output, shape index: {}]  }
   0x1   :  { %3278 = sst [smem:[#allocation21_spill]] %s3262_s1 }
   0x2   :  { %3279 = sst [smem:[#allocation22_spill]] %s3265_s4 }
   0x3   :  { %3280 = sst [smem:[#allocation23_spill]] %s3271_s10 }
   0x4   :  { %3281 = sst [smem:[#allocation24_spill]] %s3272_s11 }
   0x5   :  { %16 = vsyncpa [#allocation4], 0 }
   0x6   :  { %18 = vsyncpa [#allocation4 + $0x1], 0 }
   0x7   :  { %19 = vsyncpa [#allocation7], 0 }
   0x8   :  { %20 = vsyncpa [#allocation10], 0 }
   0x9   :  { %21 = vsyncpa [#allocation13], 0 }
   0xa   :  { %22 = vsyncpa [#allocation5], 0 }
   0xb   :  { %24 = vsyncpa [#allocation5 + $0x1], 0  ;;  %s2741_s17 = smov 0   ;;  %s2743_s18 = smov 0  }
   0xc   :  { %s2745_s19 = smov 0   ;;  %s2747_s20 = smov 0  }
   0xd LB: > { %s2668_s21 = smov [#allocation6]   ;;  %s2762_s23 = sadd.s32 4294967295, %s2666_s20   ;;  %s2666_s20 = sphi %s2747_s20, %s3309_s20   ;;  %s2662_s19 = sphi %s2745_s19, %s3308_s19   ;;  %s2658_s18 = sphi %s2743_s18, %s3307_s18   ;;  %s2654_s17 = sphi %s2741_s17, %s3306_s17  }
   0xe   : > { %s309_s22 = sshll.u32 %s2668_s21, 4  ;;  %p1668_p0 = scmp.ge.s32.totalorder %s2666_s20, 1  ;;  %s2767_s22 = int_to_ptr.vmem [resolvable:$true] %s309_s22 }
   0xf   : > { %p3274_p1 = scmp.eq.s32.totalorder %s2762_s23, 0  ;;  %p297_p2 = scmp.lt.s32.totalorder %s2666_s20, 3 }
  0x10   : > { %s2669_s25 = smov [#allocation9]   ;;  %s2670_s28 = smov [#allocation12]  }
  0x11   : > { %p2769_p3 = pnand %p1668_p0, %p297_p2  ;;  %s335_s26 = sshll.u32 %s2669_s25, 4  ;;  %s2782_s26 = int_to_ptr.vmem [resolvable:$true] %s335_s26 }
  0x12   : > { %s370_s29 = sshll.u32 %s2670_s28, 4  ;;  %s3284_s1 = sld [smem:[#allocation21_spill]]  ;;  %s2784_s29 = int_to_ptr.vmem [resolvable:$true] %s370_s29 }
  0x13   : > { %s3282_s24 = scalar_select %p2769_p3, 1, 0 }
  0x14   : > { %p2302_p5 = pneg %p2769_p3 }
  0x16   : > { %p2778_p6 = pnand %p2302_p5, %p3274_p1 }
  0x18   : > { %s2390_s13 = scalar_lea.hbm %s3284_s1, 2048  ;;  %p2794_p8 = pneg %p2778_p6 }
  0x19   : > { %p2391_p7 = scmp.ne.s32.totalorder %s3284_s1, %s2390_s13  ;;  %p2397_p11 = scmp.lt.u32.totalorder %s2390_s13, %s3284_s1 }
  0x1b   : > { %p2393_p9 = pnand %p2794_p8, %p2391_p7 }
  0x1d   : > { %p2394_p10 = pneg %p2393_p9 }
  0x1f   : > { %p2399_p12 = pnand %p2397_p11, %p2394_p10 }
  0x21   : > { %2402 = shalt.err (!%p2399_p12)
}
  0x22   : > { %s2403_s28 = scalar_lea.vmem %s2767_s22, 2048  ;;  %p2411_p5 = scmp.lt.s32.totalorder %s2767_s22, %s2767_s22 }
  0x23   : > { %p2404_p13 = scmp.ne.s32.totalorder %s2767_s22, %s2403_s28  ;;  %p2412_p4 = scmp.lt.s32.totalorder %s2403_s28, %s2403_s28 }
  0x25   : > { %p2406_p0 = pnand %p2404_p13, %p2794_p8  ;;  %p2413_p7 = por %p2412_p4, %p2411_p5 }
  0x27   : > { %p2407_p2 = pneg %p2406_p0 }
  0x29   : > { %p2414_p9 = pnand %p2413_p7, %p2407_p2 }
  0x2b   : > { %2417 = shalt.err (!%p2414_p9)
}
  0x2c   : > { %s3276_s30 = smov 128   ;;  %s2672_s12 = smov 8  }
  0x2d   : > { %2305 = dma.hbm_to_vmem [thread:$0]  (!%p2778_p6), %s3284_s1, 2048, %s2767_s22, [#allocation7], %s3276_s30, %s3276_s30, %s2672_s12  }
  0x2e   : > { %s2418_s25 = scalar_lea.hbm %s3264_s3, 2048 }
  0x2f   : > { %p2419_p4 = scmp.ne.s32.totalorder %s3264_s3, %s2418_s25  ;;  %p2425_p12 = scmp.lt.u32.totalorder %s2418_s25, %s3264_s3 }
  0x31   : > { %p2421_p10 = pnand %p2419_p4, %p2794_p8 }
  0x33   : > { %p2422_p11 = pneg %p2421_p10 }
  0x35   : > { %p2427_p13 = pnand %p2425_p12, %p2422_p11 }
  0x37   : > { %2430 = shalt.err (!%p2427_p13)
}
  0x38   : > { %s2431_s22 = scalar_lea.vmem %s2782_s26, 2048  ;;  %p2439_p7 = scmp.lt.s32.totalorder %s2782_s26, %s2782_s26 }
  0x39   : > { %p2432_p0 = scmp.ne.s32.totalorder %s2782_s26, %s2431_s22  ;;  %p2440_p9 = scmp.lt.s32.totalorder %s2431_s22, %s2431_s22 }
  0x3b   : > { %p2434_p2 = pnand %p2432_p0, %p2794_p8  ;;  %p2441_p4 = por %p2440_p9, %p2439_p7 }
  0x3d   : > { %p2435_p5 = pneg %p2434_p2 }
  0x3f   : > { %p2442_p10 = pnand %p2441_p4, %p2435_p5 }
  0x41   : > { %2445 = shalt.err (!%p2442_p10)
}
  0x42   : > { %2311 = dma.hbm_to_vmem [thread:$0]  (!%p2778_p6), %s3264_s3, 2048, %s2782_s26, [#allocation10], %s3276_s30, %s3276_s30, %s2672_s12  }
  0x43   : > { %s2446_s14 = scalar_lea.hbm %s3269_s8, 6400 }
  0x44   : > { %p2447_p11 = scmp.ne.s32.totalorder %s3269_s8, %s2446_s14  ;;  %p2453_p0 = scmp.lt.u32.totalorder %s2446_s14, %s3269_s8 }
  0x46   : > { %p2449_p12 = pnand %p2447_p11, %p2794_p8 }
  0x48   : > { %p2450_p13 = pneg %p2449_p12 }
  0x4a   : > { %p2455_p2 = pnand %p2453_p0, %p2450_p13 }
  0x4c   : > { %2458 = shalt.err (!%p2455_p2)
}
  0x4d   : > { %s2459_s26 = scalar_lea.vmem %s2784_s29, 6400  ;;  %p2467_p4 = scmp.lt.s32.totalorder %s2784_s29, %s2784_s29 }
  0x4e   : > { %p2460_p5 = scmp.ne.s32.totalorder %s2784_s29, %s2459_s26  ;;  %p2468_p10 = scmp.lt.s32.totalorder %s2459_s26, %s2459_s26 }
  0x50   : > { %p2462_p7 = pnand %p2460_p5, %p2794_p8  ;;  %p2469_p11 = por %p2468_p10, %p2467_p4 }
  0x52   : > { %p2463_p9 = pneg %p2462_p7 }
  0x54   : > { %p2470_p12 = pnand %p2469_p11, %p2463_p9 }
  0x56   : > { %2473 = shalt.err (!%p2470_p12)
}
  0x57   : > { %2317 = dma.hbm_to_vmem [thread:$0]  (!%p2778_p6), %s3269_s8, 6400, %s2784_s29, [#allocation13], %s3276_s30, %s3276_s30, %s2672_s12  }
  0x58   : > { %s2673_s10 = smov [#allocation8]   ;;  %s2674_s13 = smov [#allocation11]  }
  0x59   : > { %s322_s11 = sshll.u32 %s2673_s10, 4  ;;  %s357_s14 = sshll.u32 %s2674_s13, 4  ;;  %s323_s11 = int_to_ptr.vmem [resolvable:$true] %s322_s11  ;;  %s358_s14 = int_to_ptr.vmem [resolvable:$true] %s357_s14 }
  0x5a   : > { %s2474_s25 = scalar_lea.hbm %s3263_s2, 2048 }
  0x5b   : > { %p2475_p13 = scmp.ne.s32.totalorder %s3263_s2, %s2474_s25  ;;  %p2481_p5 = scmp.lt.u32.totalorder %s2474_s25, %s3263_s2 }
  0x5d   : > { %p2477_p0 = pnand %p2475_p13, %p2794_p8 }
  0x5f   : > { %p2478_p2 = pneg %p2477_p0 }
  0x61   : > { %p2483_p7 = pnand %p2481_p5, %p2478_p2 }
  0x63   : > { %2486 = shalt.err (!%p2483_p7)
}
  0x64   : > { %s2487_s29 = scalar_lea.vmem %s323_s11, 2048  ;;  %p2495_p11 = scmp.lt.s32.totalorder %s323_s11, %s323_s11 }
  0x65   : > { %p2488_p9 = scmp.ne.s32.totalorder %s323_s11, %s2487_s29  ;;  %p2496_p12 = scmp.lt.s32.totalorder %s2487_s29, %s2487_s29 }
  0x67   : > { %p2490_p4 = pnand %p2488_p9, %p2794_p8  ;;  %p2497_p1 = por %p2496_p12, %p2495_p11 }
  0x69   : > { %p2491_p10 = pneg %p2490_p4 }
  0x6b   : > { %p2498_p3 = pnand %p2497_p1, %p2491_p10 }
  0x6d   : > { %2501 = shalt.err (!%p2498_p3)
}
  0x6e   : > { %2308 = dma.hbm_to_vmem [thread:$0]  (!%p2778_p6), %s3263_s2, 2048, %s323_s11, [#allocation7], %s3276_s30, %s3276_s30, %s2672_s12  }
  0x6f   : > { %s2502_s15 = scalar_lea.hbm %s3268_s7, 2048 }
  0x70   : > { %p2503_p1 = scmp.ne.s32.totalorder %s3268_s7, %s2502_s15  ;;  %p2509_p0 = scmp.lt.u32.totalorder %s2502_s15, %s3268_s7 }
  0x72   : > { %p2505_p3 = pnand %p2503_p1, %p2794_p8 }
  0x74   : > { %p2506_p13 = pneg %p2505_p3 }
  0x76   : > { %p2511_p2 = pnand %p2509_p0, %p2506_p13 }
  0x78   : > { %2514 = shalt.err (!%p2511_p2)
}
  0x79   : > { %s2515_s22 = scalar_lea.vmem %s358_s14, 2048  ;;  %p2523_p4 = scmp.lt.s32.totalorder %s358_s14, %s358_s14 }
  0x7a   : > { %p2516_p5 = scmp.ne.s32.totalorder %s358_s14, %s2515_s22  ;;  %p2524_p10 = scmp.lt.s32.totalorder %s2515_s22, %s2515_s22 }
  0x7c   : > { %p2518_p7 = pnand %p2516_p5, %p2794_p8  ;;  %p2525_p11 = por %p2524_p10, %p2523_p4 }
  0x7e   : > { %p2519_p9 = pneg %p2518_p7 }
  0x80   : > { %p2526_p12 = pnand %p2525_p11, %p2519_p9 }
  0x82   : > { %2529 = shalt.err (!%p2526_p12)
}
  0x83   : > { %2314 = dma.hbm_to_vmem [thread:$0]  (!%p2778_p6), %s3268_s7, 2048, %s358_s14, [#allocation10], %s3276_s30, %s3276_s30, %s2672_s12  }
  0x84   : > { %s2675_s1 = smov [#allocation14]   ;;  %s2530_s15 = scalar_lea.hbm %s3270_s9, 2048 }
  0x85   : > { %s383_s4 = sshll.u32 %s2675_s1, 4  ;;  %p2531_p1 = scmp.ne.s32.totalorder %s3270_s9, %s2530_s15  ;;  %s384_s4 = int_to_ptr.vmem [resolvable:$true] %s383_s4 }
  0x86   : > { %p2537_p0 = scmp.lt.u32.totalorder %s2530_s15, %s3270_s9 }
  0x87   : > { %p2533_p3 = pnand %p2531_p1, %p2794_p8 }
  0x89   : > { %p2534_p13 = pneg %p2533_p3 }
  0x8b   : > { %p2539_p2 = pnand %p2537_p0, %p2534_p13 }
  0x8d   : > { %2542 = shalt.err (!%p2539_p2)
}
  0x8e   : > { %s2543_s14 = scalar_lea.vmem %s384_s4, 2048  ;;  %p2551_p4 = scmp.lt.s32.totalorder %s384_s4, %s384_s4 }
  0x8f   : > { %p2544_p5 = scmp.ne.s32.totalorder %s384_s4, %s2543_s14  ;;  %p2552_p10 = scmp.lt.s32.totalorder %s2543_s14, %s2543_s14 }
  0x91   : > { %p2546_p7 = pnand %p2544_p5, %p2794_p8  ;;  %p2553_p11 = por %p2552_p10, %p2551_p4 }
  0x93   : > { %p2547_p9 = pneg %p2546_p7 }
  0x95   : > { %p2554_p12 = pnand %p2553_p11, %p2547_p9 }
  0x97   : > { %2557 = shalt.err (!%p2554_p12)
}
  0x98   : > { %2320 = dma.hbm_to_vmem [thread:$0]  (!%p2778_p6), %s3270_s9, 2048, %s384_s4, [#allocation13], %s3276_s30, %s3276_s30, %s2672_s12  }
  0x99   : > { %s1667_s27 = sadd.s32 4294967294, %s2666_s20   ;;  %s2935_s16 = sadd.s32 1, %s2666_s20  }
  0x9a   : > { %s34_s29 = ssub.s32 %s2666_s20, %s2935_s16  ;;  %s37_s1 = sadd.s32 1, %s2662_s19 }
  0x9b   : > { %p35_p8 = scmp.eq.s32.totalorder %s34_s29, 0  ;;  %p44_p1 = scmp.ne.s32.totalorder %s2662_s19, %s2658_s18 }
  0x9c   : > { %p45_p3 = scmp.eq.s32.totalorder %s2666_s20, 0  ;;  %p50_p13 = scmp.ne.s32.totalorder %s2658_s18, %s2654_s17 }
  0x9d   : > { %s2946_s10 = scalar_select %p35_p8, %s2662_s19, %s37_s1  }
  0x9e   : > { %p2948_p0 = por %p45_p3, %p44_p1  ;;  %p3287_p2 = scmp.eq.s32.totalorder %s2762_s23, 0 }
  0x9f   : > { %p284_p5 = scmp.eq.s32.totalorder %s2762_s23, 1  ;;  %p290_p7 = scmp.eq.s32.totalorder %s1667_s27, 1 }
  0xa0   : > { %p2954_p6 = por %p3287_p2, %p50_p13  ;;  %p2335_p9 = scmp.lt.s32.totalorder %s2666_s20, 2 }
  0xa1   : > { %s400_s15 = sand.u32 1, %s2662_s19   ;;  %p2961_p4 = por %p284_p5, %p44_p1 }
  0xa2   : > { %p2965_p10 = por %p290_p7, %p50_p13  ;;  %s1676_s28 = sshll.u32 %s400_s15, 4 }
  0xa3   : > { %s3289_s21 = scalar_select %p2961_p4, 1, 0 }
  0xa4   : > { %s3290_s25 = scalar_select %p2965_p10, 1, 0 }
  0xa5   : > { %s1712_s26 = sshll.u32 %s2666_s20, 8  ;;  %s404_s27 = scalar_lea.vmem [#allocation3], %s1676_s28 }
  0xa6   : > { %s2973_s11 = scalar_lea.hbm %s3261_s0, %s1712_s26  ;;  %s411_s29 = sshll.u32 %s404_s27, 4  ;;  %s2975_s29 = int_to_ptr.vmem [resolvable:$true] %s411_s29 }
  0xa7   : > { %p2979_p11 = pnand %p2335_p9, %p2948_p0  ;;  %s2983_s30 = scalar_lea.sflag [#allocation4], %s400_s15 }
  0xa8   : > { %s2558_s14 = scalar_lea.hbm %s2973_s11, 256  ;;  %s2563_s13 = scalar_lea.hbm %s3261_s0, 512 }
  0xa9   : > { %p2559_p12 = scmp.ne.s32.totalorder %s2973_s11, %s2558_s14  ;;  %p2560_p8 = pneg %p2979_p11 }
  0xaa   : > { %p2564_p13 = scmp.lt.u32.totalorder %s2973_s11, %s3261_s0  ;;  %p2565_p0 = scmp.lt.u32.totalorder %s2563_s13, %s2558_s14 }
  0xab   : > { %p2561_p1 = pnand %p2560_p8, %p2559_p12  ;;  %p2567_p5 = scmp.lt.u32.totalorder %s2558_s14, %s2973_s11 }
  0xac   : > { %p2566_p2 = por %p2565_p0, %p2564_p13 }
  0xad   : > { %p2562_p3 = pneg %p2561_p1 }
  0xae   : > { %p2568_p7 = por %p2567_p5, %p2566_p2 }
  0xb0   : > { %p2569_p9 = pnand %p2568_p7, %p2562_p3 }
  0xb2   : > { %2572 = shalt.err (!%p2569_p9)
}
  0xb3   : > { %s2573_s15 = scalar_lea.vmem %s2975_s29, 256  ;;  %s2676_s28 = smov [#allocation3]  }
  0xb4   : > { %p2574_p12 = scmp.ne.s32.totalorder %s2975_s29, %s2573_s15  ;;  %s2578_s26 = sshll.u32 %s2676_s28, 4  ;;  %s2579_s26 = int_to_ptr.vmem [resolvable:$false] %s2578_s26 }
  0xb5   : > { %s2580_s22 = scalar_lea.vmem %s2579_s26, 512  ;;  %p2581_p4 = scmp.lt.s32.totalorder %s2975_s29, %s2579_s26 }
  0xb6   : > { %p2576_p1 = pnand %p2574_p12, %p2560_p8  ;;  %p2582_p13 = scmp.lt.s32.totalorder %s2580_s22, %s2573_s15 }
  0xb8   : > { %p2577_p10 = pneg %p2576_p1  ;;  %p2583_p0 = por %p2582_p13, %p2581_p4 }
  0xba   : > { %p2584_p2 = pnand %p2583_p0, %p2577_p10 }
  0xbc   : > { %2587 = shalt.err (!%p2584_p2)
}
  0xbd   : > { %s3292_s14 = smov 128   ;;  %p3293_p8 = scmp.ne.s32.totalorder %s3282_s24, 0 }
  0xbe   : > { %2324 = dma.hbm_to_vmem [thread:$0]  (!%p2979_p11), %s2973_s11, 256, %s2975_s29, %s2983_s30, %s3292_s14, %s3292_s14, %s2672_s12  }
  0xbf   : > { %423 = sbr.rel (%p3293_p8) target bundleno = 1351 (0x547), region = 64  ;;  %s3017_s13 = sand.u32 (!%p3293_p8), 1, %s2658_s18  }
  0xc0   : > { %s1680_s27 = sshll.u32 (!%p3293_p8), %s3017_s13, 4  ;;  %s426_s15 = scalar_lea.sflag (!%p3293_p8), [#allocation4], %s3017_s13 }
  0xc1   : > { %s3023_s1 = scalar_lea.vmem (!%p3293_p8), [#allocation3], %s1680_s27 }
  0xc6   : > { %2633 = dma.done.wait (%p2954_p6), %s426_s15, 256  }
  0xc7   : > { %2635 = vsyncadd (%p2954_p6), %s426_s15, 4294967040  ;;  %p3294_p4 = scmp.eq.s32.totalorder %s2762_s23, 0 }
  0xc9   : > { %2637 = dma.done.wait (%p3294_p4), [#allocation7], 4096   ;;  %p3295_p10 = pmov %p3294_p4 }
  0xca   : > { %p3296_p11 = pmov %p3294_p4 }
  0xcb   : > { %2639 = vsyncadd (%p3295_p10), [#allocation7], 4294963200 }
  0xcc   : > { %2641 = dma.done.wait (%p3296_p11), [#allocation10], 4096   ;;  %p3297_p3 = pmov %p3294_p4 }
  0xce   : > { %2643 = vsyncadd (%p3297_p3), [#allocation10], 4294963200  ;;  %p3298_p5 = pmov %p3297_p3 }
  0xcf   : > { %p3299_p7 = pmov %p3297_p3 }
  0xd0   : > { %2645 = dma.done.wait (%p3298_p5), [#allocation13], 8448  }
  0xd1   : > { %2647 = vsyncadd (%p3299_p7), [#allocation13], 4294958848  ;;  %v496_v0 = vld [vmem:[#allocation6] sm:$0xff]  ;;  %v497_v1 = vld [vmem:[#allocation6 + $0x8] sm:$0xff]  ;;  %s3300_s22 = sld [smem:[#allocation22_spill]]  ;;  %vm850_vm0 = vcmask 130048  }
  0xd2   : > { %v498_v2 = vld [vmem:[#allocation6 + $0x10] sm:$0xff]  ;;  %v2078_v3 = vpack.c.bf16 %v497_v1, %v496_v0  ;;  %v499_v4 = vld [vmem:[#allocation6 + $0x18] sm:$0xff]  ;;  %v500_v6 = vld [vmem:[#allocation6 + $0x20] sm:$0xff]  ;;  %s1713_s24 = sshll.u32 %s2762_s23, 8  ;;  %s491_s30 = scalar_lea.vmem [#allocation15], %s1680_s27 }
  0xd3   : > { %v2082_v5 = vpack.c.bf16 %v499_v4, %v498_v2  ;;  %v501_v7 = vld [vmem:[#allocation6 + $0x28] sm:$0xff]  ;;  %v3042_v9 = vld [vmem:[%s3023_s1] sm:$0xff]  ;;  %v503_v11 = vld [vmem:[#allocation6 + $0x38] sm:$0xff]  ;;  %s1537_s12 = sshll.u32 %s491_s30, 4  ;;  %s3302_s29 = sld [smem:[#allocation24_spill]]  ;;  %s3217_s12 = int_to_ptr.vmem [resolvable:$true] %s1537_s12 }
  0xd4   : > { %2079 = vmatprep.subr.bf16.mxu0 %v2078_v3  ;;  %v2086_v8 = vpack.c.bf16 %v501_v7, %v500_v6  ;;  %v502_v10 = vld [vmem:[#allocation6 + $0x30] sm:$0xff]  ;;  %1872 = vmatprep.mubr.f32.mxu0 %v3042_v9  ;;  %v504_v13 = vld [vmem:[#allocation6 + $0x40] sm:$0xff]  ;;  %v505_v14 = vld [vmem:[#allocation6 + $0x48] sm:$0xff]  ;;  %s1524_s23 = scalar_lea.sflag [#allocation5], %s3017_s13  ;;  %s2588_s26 = scalar_lea.vmem %s3217_s12, 256 }
  0xd5   : > { %2081 = vmatpush3.bf16.msra.mxu0 %v2078_v3  ;;  %1907 = vmatprep.mubr.f32.mxu1 %v3042_v9  ;;  %v2090_v12 = vpack.c.bf16 %v503_v11, %v502_v10  ;;  %v612_v15 = vld [vmem:[#allocation9] sm:$0xff]  ;;  %v613_v16 = vld [vmem:[#allocation9 + $0x8] sm:$0xff]  ;;  %v614_v18 = vld [vmem:[#allocation9 + $0x10] sm:$0xff]  ;;  %v2094_v20 = vpack.c.bf16 %v505_v14, %v504_v13  ;;  %p2589_p6 = scmp.ne.s32.totalorder %s3217_s12, %s2588_s26  ;;  %p3303_p9 = scmp.ne.s32.totalorder %s3289_s21, 0 }
  0xd6   : > { %2083 = vmatprep.subr.bf16.mxu0 %v2082_v5  ;;  %v2110_v17 = vpack.c.bf16 %v613_v16, %v612_v15  ;;  %v615_v19 = vld [vmem:[#allocation9 + $0x18] sm:$0xff]  ;;  %v616_v22 = vld [vmem:[#allocation9 + $0x20] sm:$0xff]  ;;  %v617_v23 = vld [vmem:[#allocation9 + $0x28] sm:$0xff]  ;;  %s2678_s27 = smov [#allocation15]  }
  0xd7   : > { %v2114_v21 = vpack.c.bf16 %v615_v19, %v614_v18  ;;  %v506_v24 = vld [vmem:[#allocation6 + $0x50] sm:$0xff]  ;;  %v507_v25 = vld [vmem:[#allocation6 + $0x58] sm:$0xff]  ;;  %v2118_v26 = vpack.c.bf16 %v617_v23, %v616_v22  ;;  %v508_v30 = vld [vmem:[#allocation6 + $0x60] sm:$0xff]  ;;  %p2590_p12 = pnand %p2589_p6, %p3303_p9 }
  0xd8   : > { %2111 = vmatprep.subr.bf16.mxu1 %v2110_v17  ;;  %v2098_v27 = vpack.c.bf16 %v507_v25, %v506_v24  ;;  %v618_v28 = vld [vmem:[#allocation9 + $0x30] sm:$0xff]  ;;  %v619_v29 = vld [vmem:[#allocation9 + $0x38] sm:$0xff]  ;;  %v509_v31 = vld [vmem:[#allocation6 + $0x68] sm:$0xff] }
  0xd9   : > { %2085 = vmatpush3.bf16.msra.mxu0 %v2082_v5  ;;  %2113 = vmatpush3.bf16.msra.mxu1 %v2110_v17  ;;  %v2122_v32 = vpack.c.bf16 %v619_v29, %v618_v28  ;;  %v2102_v33 = vpack.c.bf16 %v509_v31, %v508_v30  ;;  %v620_v34 = vld [vmem:[#allocation9 + $0x40] sm:$0xff]  ;;  %v621_v35 = vld [vmem:[#allocation9 + $0x48] sm:$0xff]  ;;  %v510_v36 = vld [vmem:[#allocation6 + $0x70] sm:$0xff]  ;;  %s3215_s28 = scalar_lea.hbm %s3302_s29, %s1713_s24  ;;  %p2591_p1 = pneg %p2590_p12 }
  0xda   : > { %2087 = vmatprep.subr.bf16.mxu0 %v2086_v8  ;;  %2115 = vmatprep.subr.bf16.mxu1 %v2114_v21  ;;  %v511_v37 = vld [vmem:[#allocation6 + $0x78] sm:$0xff]  ;;  %v2126_v38 = vpack.c.bf16 %v621_v35, %v620_v34  ;;  %v622_v40 = vld [vmem:[#allocation9 + $0x50] sm:$0xff]  ;;  %v596_v42 = vld [vmem:[#allocation8] sm:$0xff]  ;;  %v2677_v34 = vmov 0.0  }
  0xdb   : > { %v2106_v39 = vpack.c.bf16 %v511_v37, %v510_v36  ;;  %v623_v41 = vld [vmem:[#allocation9 + $0x58] sm:$0xff]  ;;  %v597_v43 = vld [vmem:[#allocation8 + $0x8] sm:$0xff]  ;;  %v598_v46 = vld [vmem:[#allocation8 + $0x10] sm:$0xff]  ;;  %710 = vst [vmem:[#allocation2] sm:$0xff] %v2677_v34 }
  0xdc   : > { %v2130_v44 = vpack.c.bf16 %v623_v41, %v622_v40  ;;  %v2142_v45 = vpack.c.bf16 %v597_v43, %v596_v42  ;;  %v599_v47 = vld [vmem:[#allocation8 + $0x18] sm:$0xff]  ;;  %v624_v48 = vld [vmem:[#allocation9 + $0x60] sm:$0xff]  ;;  %v625_v49 = vld [vmem:[#allocation9 + $0x68] sm:$0xff]  ;;  %711 = vst [vmem:[#allocation2 + $0x8] sm:$0xff] %v2677_v34 }
  0xdd   : > { %2089 = vmatpush3.bf16.msra.mxu0 %v2086_v8  ;;  %2117 = vmatpush3.bf16.msra.mxu1 %v2114_v21  ;;  %v495_v50 = vld [vmem:[%s3023_s1 + $0x8] sm:$0xff]  ;;  %v2146_v51 = vpack.c.bf16 %v599_v47, %v598_v46  ;;  %v2134_v52 = vpack.c.bf16 %v625_v49, %v624_v48  ;;  %v626_v53 = vld [vmem:[#allocation9 + $0x70] sm:$0xff]  ;;  %v600_v55 = vld [vmem:[#allocation8 + $0x20] sm:$0xff]  ;;  %714 = vst [vmem:[#allocation2 + $0x20] sm:$0xff] %v2677_v34  ;;  %s3301_s1 = sld [smem:[#allocation23_spill]] }
  0xde   : > { %2091 = vmatprep.subr.bf16.mxu0 %v2090_v12  ;;  %2119 = vmatprep.subr.bf16.mxu1 %v2118_v26  ;;  %v627_v54 = vld [vmem:[#allocation9 + $0x78] sm:$0xff]  ;;  %v601_v56 = vld [vmem:[#allocation8 + $0x28] sm:$0xff]  ;;  %v602_v59 = vld [vmem:[#allocation8 + $0x30] sm:$0xff]  ;;  %715 = vst [vmem:[#allocation2 + $0x28] sm:$0xff] %v2677_v34 }
  0xdf   : > { %v2138_v57 = vpack.c.bf16 %v627_v54, %v626_v53  ;;  %v2150_v58 = vpack.c.bf16 %v601_v56, %v600_v55  ;;  %v603_v60 = vld [vmem:[#allocation8 + $0x38] sm:$0xff]  ;;  %v604_v62 = vld [vmem:[#allocation8 + $0x40] sm:$0xff]  ;;  %v605_v63 = vld [vmem:[#allocation8 + $0x48] sm:$0xff] }
  0xe0   : > { %v2154_v61 = vpack.c.bf16 %v603_v60, %v602_v59  ;;  %v2158_v0 = vpack.c.bf16 %v605_v63, %v604_v62  ;;  %v606_v1 = vld [vmem:[#allocation8 + $0x50] sm:$0xff]  ;;  %v607_v2 = vld [vmem:[#allocation8 + $0x58] sm:$0xff]  ;;  %v608_v4 = vld [vmem:[#allocation8 + $0x60] sm:$0xff] }
  0xe1   : > { %2093 = vmatpush3.bf16.msra.mxu0 %v2090_v12  ;;  %2121 = vmatpush3.bf16.msra.mxu1 %v2118_v26  ;;  %v2162_v3 = vpack.c.bf16 %v607_v2, %v606_v1  ;;  %v609_v5 = vld [vmem:[#allocation8 + $0x68] sm:$0xff]  ;;  %v610_v7 = vld [vmem:[#allocation8 + $0x70] sm:$0xff]  ;;  %v611_v8 = vld [vmem:[#allocation8 + $0x78] sm:$0xff] }
  0xe2   : > { %2095 = vmatprep.subr.bf16.mxu0 %v2094_v20  ;;  %2123 = vmatprep.subr.bf16.mxu1 %v2122_v32  ;;  %v2166_v6 = vpack.c.bf16 %v609_v5, %v608_v4  ;;  %v3048_v10 = vld [vmem:[#allocation11] sm:$0xff]  ;;  %v3050_v11 = vld [vmem:[#allocation11 + $0x8] sm:$0xff]  ;;  %v3052_v12 = vld [vmem:[#allocation11 + $0x10] sm:$0xff] }
  0xe3   : > { %v2210_v13 = vpack.c.bf16 %v3050_v11, %v3048_v10  ;;  %v3056_v14 = vld [vmem:[#allocation11 + $0x18] sm:$0xff]  ;;  %v3060_v16 = vld [vmem:[#allocation11 + $0x20] sm:$0xff]  ;;  %v3062_v17 = vld [vmem:[#allocation11 + $0x28] sm:$0xff] }
  0xe4   : > { %v2214_v15 = vpack.c.bf16 %v3056_v14, %v3052_v12  ;;  %v2218_v18 = vpack.c.bf16 %v3062_v17, %v3060_v16  ;;  %v3066_v19 = vld [vmem:[#allocation11 + $0x30] sm:$0xff]  ;;  %v3072_v22 = vld [vmem:[#allocation11 + $0x40] sm:$0xff]  ;;  %v3074_v23 = vld [vmem:[#allocation11 + $0x48] sm:$0xff] }
  0xe5   : > { %2097 = vmatpush3.bf16.msra.mxu0 %v2094_v20  ;;  %2125 = vmatpush3.bf16.msra.mxu1 %v2122_v32  ;;  %v3068_v20 = vld [vmem:[#allocation11 + $0x38] sm:$0xff]  ;;  %v2226_v24 = vpack.c.bf16 %v3074_v23, %v3072_v22  ;;  %v3078_v25 = vld [vmem:[#allocation11 + $0x50] sm:$0xff]  ;;  %v3084_v28 = vld [vmem:[#allocation11 + $0x60] sm:$0xff] }
  0xe6   : > { %2099 = vmatprep.subr.bf16.mxu0 %v2098_v27  ;;  %2127 = vmatprep.subr.bf16.mxu1 %v2126_v38  ;;  %v2222_v21 = vpack.c.bf16 %v3068_v20, %v3066_v19  ;;  %v3080_v26 = vld [vmem:[#allocation11 + $0x58] sm:$0xff]  ;;  %v3086_v29 = vld [vmem:[#allocation11 + $0x68] sm:$0xff]  ;;  %v3090_v31 = vld [vmem:[#allocation11 + $0x70] sm:$0xff] }
  0xe7   : > { %v2234_v30 = vpack.c.bf16 %v3086_v29, %v3084_v28  ;;  %v3092_v32 = vld [vmem:[#allocation11 + $0x78] sm:$0xff]  ;;  %v1689_v37 = vld [vmem:[%s3267_s6] ss:$0 sm:$0xff]  ;;  %v1234_v48 = vld [vmem:[#allocation12 + $0x20] sm:$0xff] }
  0xe8   : > { %v1222_v40 = vld [vmem:[#allocation2 + $0x7] sm:$0xff]  ;;  %v1235_v54 = vld [vmem:[#allocation12 + $0x28] sm:$0xff] }
  0xe9   : > { %2101 = vmatpush3.bf16.msra.mxu0 %v2098_v27  ;;  %2129 = vmatpush3.bf16.msra.mxu1 %v2126_v38  ;;  %v2230_v27 = vpack.c.bf16 %v3080_v26, %v3078_v25  ;;  %v1218_v38 = vld [vmem:[#allocation12] sm:$0xff]  ;;  %v1225_v41 = vld [vmem:[#allocation12 + $0x10] sm:$0xff]  ;;  %v1226_v53 = vld [vmem:[#allocation12 + $0x18] sm:$0xff] }
  0xea   : > { %2103 = vmatprep.subr.bf16.mxu0 %v2102_v33  ;;  %2131 = vmatprep.subr.bf16.mxu1 %v2130_v44  ;;  %v1227_v47 = vmul.f32 %v1225_v41, %v1222_v40  ;;  %v1243_v55 = vld [vmem:[#allocation12 + $0x30] sm:$0xff]  ;;  %v733_v41 = vld [vmem:[%s3266_s5 + $0x8] sm:$0xff] }
  0xeb   : > { %v1259_v59 = vld [vmem:[#allocation12 + $0x50] sm:$0xff] }
  0xec   : > { %v1277_v34 = vld [vmem:[#allocation12 + $0x70] sm:$0xff] }
  0xed   : > { %2105 = vmatpush3.bf16.msra.mxu0 %v2102_v33  ;;  %2133 = vmatpush3.bf16.msra.mxu1 %v2130_v44  ;;  %v2238_v33 = vpack.c.bf16 %v3092_v32, %v3090_v31 }
  0xee   : > { %2107 = vmatprep.subr.bf16.mxu0 %v2106_v39  ;;  %2135 = vmatprep.subr.bf16.mxu1 %v2134_v52 }
  0xf1   : > { %2109 = vmatpush3.bf16.msra.mxu0 %v2106_v39  ;;  %2137 = vmatpush3.bf16.msra.mxu1 %v2134_v52  ;;  %v1216_v39 = vld [vmem:[#allocation2 + $0x6] sm:$0xff]  ;;  %v1219_v52 = vld [vmem:[#allocation12 + $0x8] sm:$0xff] }
  0xf2   : > { %2143 = vmatprep.subr.bf16.mxu0 %v2142_v45  ;;  %2139 = vmatprep.subr.bf16.mxu1 %v2138_v57  ;;  %v1220_v46 = vmul.f32 %v1218_v38, %v1216_v39  ;;  %v1260_v39 = vld [vmem:[#allocation12 + $0x58] sm:$0xff] }
  0xf4   : > { %1873 = vmatmul.mubr.f32.vlgmr.msra.gmra.mrb[0].mxu0 %v495_v50 }
  0xf5   : > { %2145 = vmatpush3.bf16.msra.mxu0 %v2142_v45  ;;  %1942 = vmatprep.mubr.f32.mxu0 %v3042_v9  ;;  %v2170_v9 = vpack.c.bf16 %v611_v8, %v610_v7  ;;  %v1268_v7 = vld [vmem:[#allocation12 + $0x60] sm:$0xff] }
  0xf6   : > { %2147 = vmatprep.subr.bf16.mxu0 %v2146_v51  ;;  %2141 = vmatpush3.bf16.msra.mxu1 %v2138_v57  ;;  %v1244_v57 = vld [vmem:[#allocation12 + $0x38] sm:$0xff] }
  0xf9   : > { %2149 = vmatpush3.bf16.msra.mxu0 %v2146_v51  ;;  %1908 = vmatmul.mubr.f32.vlgmr.msra.gmra.mrb[0].mxu1 %v495_v50  ;;  %v1236_v51 = vmul.f32 0.0, %v1234_v48  ;;  %v1286_v48 = vld [vmem:[#allocation12 + $0x80] sm:$0xff] }
  0xfa   : > { %2151 = vmatprep.subr.bf16.mxu0 %v2150_v58 }
  0xfd   : > { %2153 = vmatpush3.bf16.msra.mxu0 %v2150_v58  ;;  %v1252_v58 = vld [vmem:[#allocation12 + $0x40] sm:$0xff] }
  0xfe   : > { %2155 = vmatprep.subr.bf16.mxu0 %v2154_v61 }
 0x101   : > { %2157 = vmatpush3.bf16.msra.mxu0 %v2154_v61 }
 0x102   : > { %2159 = vmatprep.subr.bf16.mxu0 %v2158_v0 }
 0x105   : > { %2161 = vmatpush3.bf16.msra.mxu0 %v2158_v0 }
 0x106   : > { %2163 = vmatprep.subr.bf16.mxu0 %v2162_v3 }
 0x109   : > { %2165 = vmatpush3.bf16.msra.mxu0 %v2162_v3 }
 0x10a   : > { %2167 = vmatprep.subr.bf16.mxu0 %v2166_v6 }
 0x10d   : > { %2169 = vmatpush3.bf16.msra.mxu0 %v2166_v6 }
 0x10e   : > { %2171 = vmatprep.subr.bf16.mxu0 %v2170_v9 }
 0x111   : > { %2173 = vmatpush3.bf16.msra.mxu0 %v2170_v9 }
 0x112   : > { %2211 = vmatprep.subr.bf16.mxu0 %v2210_v13 }
 0x114   : > { %1943 = vmatmul.mubr.f32.vlgmr.msra.gmra.mrb[2].mxu0 %v495_v50  ;;  %v1229_v50 = vadd.f32 %v1227_v47, %v1220_v46 }
 0x115   : > { %2213 = vmatpush3.bf16.msra.mxu0 %v2210_v13 }
 0x116   : > { %2215 = vmatprep.subr.bf16.mxu0 %v2214_v15  ;;  %v1238_v56 = vadd.f32 %v1236_v51, %v1229_v50 }
 0x119   : > { %2217 = vmatpush3.bf16.msra.mxu0 %v2214_v15 }
 0x11a   : > { %2219 = vmatprep.subr.bf16.mxu0 %v2218_v18 }
 0x11d   : > { %2221 = vmatpush3.bf16.msra.mxu0 %v2218_v18  ;;  %v1253_v18 = vld [vmem:[#allocation12 + $0x48] sm:$0xff] }
 0x11e   : > { %2223 = vmatprep.subr.bf16.mxu0 %v2222_v21 }
 0x121   : > { %2225 = vmatpush3.bf16.msra.mxu0 %v2222_v21 }
 0x122   : > { %2227 = vmatprep.subr.bf16.mxu0 %v2226_v24 }
 0x125   : > { %2229 = vmatpush3.bf16.msra.mxu0 %v2226_v24 }
 0x126   : > { %2231 = vmatprep.subr.bf16.mxu0 %v2230_v27 }
 0x129   : > { %2233 = vmatpush3.bf16.msra.mxu0 %v2230_v27 }
 0x12a   : > { %2235 = vmatprep.subr.bf16.mxu0 %v2234_v30 }
 0x12d   : > { %2237 = vmatpush3.bf16.msra.mxu0 %v2234_v30 }
 0x12e   : > { %2239 = vmatprep.subr.bf16.mxu0 %v2238_v33 }
 0x131   : > { %2241 = vmatpush3.bf16.msra.mxu0 %v2238_v33 }
 0x1c7   : > { %v3096_v35 = vpop.f32.mrb[0].mxu0 }
 0x1c8   : > { %v3098_v36 = vpop.f32.mrb[1].mxu0 }
 0x1cc   : > { %v1909_v42 = vpop.f32.mrb[0].mxu1 }
 0x1cd   : > { %v3103_v43 = vadd.f32 %v1909_v42, %v1689_v37  ;;  %v701_v44 = vpop.f32.mrb[1].mxu1 }
 0x1ce   : > { %v3105_v45 = vadd.f32 %v1689_v37, %v701_v44  ;;  %v732_v44 = vld [vmem:[%s3266_s5] sm:$0xff] }
 0x1cf   : > { %713 = vst [vmem:[#allocation2 + $0x18] sm:$0xff] %v3103_v43 }
 0x1d0   : > { %712 = vst [vmem:[#allocation2 + $0x10] sm:$0xff] %v3105_v45  ;;  %v2174_v49 = vpack.c.bf16 %v3103_v43, %v3105_v45  ;;  %v1237_v1 = vmul.f32 %v1235_v54, %v3105_v45 }
 0x1d2   : > { %2175 = vmatprep.subr.bf16.mxu1 %v2174_v49 }
 0x1d3   : > { %2177 = vmatpush3.bf16.msra.mxu1 %v2174_v49 }
 0x1d7   : > { %v1217_v60 = vld [vmem:[#allocation2 + $0xe] sm:$0xff] }
 0x1d8   : > { %v3111_v61 = vld [vmem:[#allocation2 + $0xf] sm:$0xff]  ;;  %v1221_v63 = vmul.f32 %v1219_v52, %v1217_v60 }
 0x1d9   : > { %v1240_v62 = vld [vmem:[#allocation2 + $0x9] sm:$0xff]  ;;  %v1228_v0 = vmul.f32 %v1226_v53, %v3111_v61  ;;  %v3115_v2 = vld [vmem:[#allocation2 + $0x11] sm:$0xff] }
 0x1da   : > { %v1245_v3 = vmul.f32 %v1243_v55, %v1240_v62  ;;  %v1249_v4 = vld [vmem:[#allocation2 + $0xa] sm:$0xff]  ;;  %v1246_v9 = vmul.f32 %v1244_v57, %v3115_v2  ;;  %v3118_v15 = vld [vmem:[#allocation2 + $0x12] sm:$0xff] }
 0x1db   : > { %v1254_v5 = vmul.f32 %v1252_v58, %v1249_v4  ;;  %v1265_v6 = vld [vmem:[#allocation2 + $0xb] sm:$0xff]  ;;  %v1230_v8 = vadd.f32 %v1228_v0, %v1221_v63  ;;  %v1261_v21 = vmul.f32 %v1259_v59, %v1249_v4  ;;  %v1255_v37 = vmul.f32 %v1253_v18, %v3118_v15  ;;  %v3128_v54 = vld [vmem:[#allocation2 + $0x13] sm:$0xff]  ;;  %v1294_v4 = vld [vmem:[#allocation12 + $0x90] sm:$0xff] }
 0x1dc   : > { %v1247_v13 = vadd.f32 %v1245_v3, %v1238_v56  ;;  %v1270_v30 = vmul.f32 %v1268_v7, %v1265_v6  ;;  %v1274_v33 = vld [vmem:[#allocation2 + $0xc] sm:$0xff]  ;;  %v1262_v51 = vmul.f32 %v1260_v39, %v3118_v15  ;;  %v1269_v55 = vld [vmem:[#allocation12 + $0x68] sm:$0xff]  ;;  %v1296_v7 = vmul.f32 %v1294_v4, %v1217_v60 }
 0x1dd   : > { %v1239_v24 = vadd.f32 %v1237_v1, %v1230_v8  ;;  %v1279_v42 = vmul.f32 %v1277_v34, %v1274_v33  ;;  %v1283_v47 = vld [vmem:[#allocation2 + $0xd] sm:$0xff]  ;;  %v1271_v0 = vmul.f32 %v1269_v55, %v3128_v54  ;;  %v1309_v33 = vld [vmem:[#allocation12 + $0xb0] sm:$0xff] }
 0x1de   : > { %v1256_v27 = vadd.f32 %v1254_v5, %v1247_v13  ;;  %v1288_v58 = vmul.f32 %v1286_v48, %v1283_v47  ;;  %v3131_v1 = vld [vmem:[#allocation2 + $0x14] sm:$0xff]  ;;  %v1278_v3 = vld [vmem:[#allocation12 + $0x78] sm:$0xff]  ;;  %v1688_v34 = vld [vmem:[%s3300_s22] ss:$0 sm:$0xff]  ;;  %v1311_v39 = vmul.f32 %v1309_v33, %v3111_v61  ;;  %s2592_s22 = sshll.u32 %s2678_s27, 4  ;;  %s2593_s22 = int_to_ptr.vmem [resolvable:$false] %s2592_s22 }
 0x1df   : > { %v1248_v38 = vadd.f32 %v1246_v9, %v1239_v24  ;;  %v1280_v8 = vmul.f32 %v1278_v3, %v3131_v1  ;;  %v1301_v9 = vld [vmem:[#allocation12 + $0xa0] sm:$0xff]  ;;  %v1287_v24 = vld [vmem:[#allocation12 + $0x88] sm:$0xff]  ;;  %v3140_v48 = vadd.f32 %v3096_v35, %v1688_v34  ;;  %v1295_v61 = vld [vmem:[#allocation12 + $0x98] sm:$0xff]  ;;  %s2594_s14 = scalar_lea.vmem %s2593_s22, 512  ;;  %p2595_p13 = scmp.lt.s32.totalorder %s3217_s12, %s2593_s22 }
 0x1e0   : > { %v1263_v40 = vadd.f32 %v1261_v21, %v1256_v27  ;;  %v1284_v21 = vld [vmem:[#allocation2 + $0x15] sm:$0xff]  ;;  %p2596_p0 = scmp.lt.s32.totalorder %s2594_s14, %s2588_s26 }
 0x1e1   : > { %v1257_v50 = vadd.f32 %v1255_v37, %v1248_v38  ;;  %v1333_v55 = vld [vmem:[#allocation12 + $0xe0] sm:$0xff] }
 0x1e2   : > { %v1272_v46 = vadd.f32 %v1270_v30, %v1263_v40  ;;  %v1303_v30 = vmul.f32 %v1301_v9, %v1217_v60  ;;  %v1289_v40 = vmul.f32 %v1287_v24, %v1284_v21  ;;  %v3143_v60 = vadd.f32 %v1688_v34, %v3098_v36  ;;  %v1356_v34 = vld [vmem:[#allocation12 + $0x110] sm:$0xff]  ;;  %p2597_p2 = por %p2596_p0, %p2595_p13 }
 0x1e3   : > { %v1264_v63 = vadd.f32 %v1262_v51, %v1257_v50  ;;  %v1325_v50 = vld [vmem:[#allocation12 + $0xd0] sm:$0xff]  ;;  %v1335_v36 = vmul.f32 %v1333_v55, %v3118_v15 }
 0x1e4   : > { %v1281_v57 = vadd.f32 %v1279_v42, %v1272_v46  ;;  %v594_v35 = vmax.f32 %v3143_v60, 0.0  ;;  %p2598_p8 = pnand %p2597_p2, %p2591_p1 }
 0x1e5   : > { %v1273_v18 = vadd.f32 %v1271_v0, %v1264_v63  ;;  %v1340_v63 = vld [vmem:[#allocation12 + $0xf0] sm:$0xff] }
 0x1e6   : > { %v1290_v6 = vadd.f32 %v1288_v58, %v1281_v57 }
 0x1e7   : > { %v1944_v49 = vpop.f32.mrb[2].mxu0 }
 0x1e8   : > { %v806_v52 = vadd.f32 %v1944_v49, %v733_v41  ;;  %v800_v53 = vpop.f32.mrb[3].mxu0  ;;  %v1298_v27 = vadd.f32 %v1296_v7, %v1290_v6  ;;  %v1317_v41 = vld [vmem:[#allocation12 + $0xc0] sm:$0xff]  ;;  %v1310_v6 = vld [vmem:[#allocation12 + $0xb8] sm:$0xff] }
 0x1e9   : > { %v801_v56 = vadd.f32 %v800_v53, %v732_v44  ;;  %v1282_v44 = vadd.f32 %v1280_v8, %v1273_v18  ;;  %v1319_v47 = vmul.f32 %v1317_v41, %v3105_v45  ;;  %v1292_v49 = vld [vmem:[#allocation2 + $0x16] sm:$0xff]  ;;  %v1327_v53 = vmul.f32 %v1325_v50, %v3115_v2 }
 0x1ea   : > { %v810_v59 = vmax.f32 %v806_v52, 0.0  ;;  %v1305_v38 = vadd.f32 %v1303_v30, %v1298_v27  ;;  %v1297_v58 = vmul.f32 %v1295_v61, %v1292_v49  ;;  %v595_v45 = vmax.f32 %v3140_v48, 0.0  ;;  %v1307_v2 = vld [vmem:[#allocation2 + $0x17] sm:$0xff] }
 0x1eb   : > { %v809_v62 = vmax.f32 %v801_v56, 0.0  ;;  %v1291_v57 = vadd.f32 %v1289_v40, %v1282_v44  ;;  %v1348_v8 = vld [vmem:[#allocation12 + $0x100] sm:$0xff]  ;;  %v1312_v24 = vmul.f32 %v1310_v6, %v1307_v2  ;;  %v1318_v27 = vld [vmem:[#allocation12 + $0xc8] sm:$0xff] }
 0x1ec   : > { %v1313_v46 = vadd.f32 %v1311_v39, %v1305_v38  ;;  %v1350_v33 = vmul.f32 %v1348_v8, %v3128_v54  ;;  %v1358_v38 = vmul.f32 %v1356_v34, %v3131_v1  ;;  %v1364_v40 = vld [vmem:[#allocation12 + $0x120] sm:$0xff] }
 0x1ed   : > { %v811_v5 = vadd.f32 %v810_v59, %v809_v62  ;;  %818 = vxpose.xlu0.b32.start [1/2] (short) %v809_v62, 128  ;;  %v1302_v62 = vld [vmem:[#allocation12 + $0xa8] sm:$0xff]  ;;  %v1299_v3 = vadd.f32 %v1297_v58, %v1291_v57 }
 0x1ee   : > { %v1321_v52 = vadd.f32 %v1319_v47, %v1313_v46  ;;  %v1304_v4 = vmul.f32 %v1302_v62, %v1292_v49  ;;  %v1372_v46 = vld [vmem:[#allocation12 + $0x130] sm:$0xff] }
 0x1ef   : > { %v812_v13 = vrot.slane %v811_v5, 4  ;;  %v1374_v47 = vmul.f32 %v1372_v46, %v1292_v49 }
 0x1f0   : > { %v1306_v18 = vadd.f32 %v1304_v4, %v1299_v3 }
 0x1f1   : > { %v813_v37 = vadd.f32 %v812_v13, %v811_v5  ;;  %819 = vxpose.xlu0.b32.end [2/2] (short) %v810_v59, 128  ;;  %v1329_v59 = vadd.f32 %v1327_v53, %v1321_v52  ;;  %v1342_v5 = vmul.f32 %v1340_v63, %v3118_v15  ;;  %v1320_v15 = vmul.f32 %v1318_v27, %v3103_v43  ;;  %v1387_v53 = vld [vmem:[#allocation12 + $0x150] sm:$0xff] }
 0x1f2   : > { %v1389_v61 = vmul.f32 %v1387_v53, %v1307_v2 }
 0x1f3   : > { %v814_v42 = vrot.slane %v813_v37, 2  ;;  %v1337_v7 = vadd.f32 %v1335_v36, %v1329_v59 }
 0x1f5   : > { %v815_v51 = vadd.f32 %v814_v42, %v813_v37  ;;  %v1344_v30 = vadd.f32 %v1342_v5, %v1337_v7  ;;  %v1314_v37 = vadd.f32 %v1312_v24, %v1306_v18  ;;  %v1366_v42 = vmul.f32 %v1364_v40, %v1284_v21 }
 0x1f7   : > { %v816_v56 = vrot.slane %v815_v51, 1  ;;  %v1352_v39 = vadd.f32 %v1350_v33, %v1344_v30  ;;  %v3157_v41 = vadd.f32 %v1320_v15, %v1314_v37 }
 0x1f9   : > { %v817_v0 = vadd.f32 %v816_v56, %v815_v51  ;;  %v1360_v44 = vadd.f32 %v1358_v38, %v1352_v39  ;;  %v1379_v51 = vld [vmem:[#allocation12 + $0x140] sm:$0xff] }
 0x1fa   : > { %v1381_v52 = vmul.f32 %v1379_v51, %v1292_v49  ;;  %v1395_v56 = vld [vmem:[#allocation12 + $0x160] sm:$0xff] }
 0x1fb   : > { %v1135_v9 = vmul.f32 %v817_v0, %v594_v35  ;;  %v1136_v13 = vmul.f32 %v817_v0, %v595_v45  ;;  %v1368_v50 = vadd.f32 %v1366_v42, %v1360_v44  ;;  %v1397_v57 = vmul.f32 %v1395_v56, %v3103_v43 }
 0x1fd   : > { %2040 = vmatprep.mubr.f32.mxu0 %v1135_v9  ;;  %v1376_v54 = vadd.f32 %v1374_v47, %v1368_v50 }
 0x1fe   : > { %2041 = vmatmul.mubr.f32.vlgmr.msra.gmra.mrb[4].mxu0 %v1136_v13 }
 0x1ff   : > { %v1383_v55 = vadd.f32 %v1381_v52, %v1376_v54 }
 0x201   : > { %v1391_v1 = vadd.f32 %v1389_v61, %v1383_v55 }
 0x203   : > { %v3160_v58 = vadd.f32 %v1397_v57, %v1391_v1 }
 0x26d   : > { %v834_v59 = vpop.trf.xlu0 }
 0x26e   : > { %1949 = vmatprep.mubr.msk.f32.mxu1 %vm850_vm0, %v834_v59 }
 0x271   : > { %v835_v21 = vpop.trf.xlu0 }
 0x272   : > { %1950 = vmatmul.mubr.msk.f32.vlgmr.msra.gmra.mrb[2].mxu1 %vm850_vm0, %v835_v21 }
 0x275   : > { %v836_v62 = vpop.trf.xlu0 }
 0x276   : > { %1952 = vmatprep.mubr.msk.f32.mxu1 %vm850_vm0, %v836_v62  ;;  %v1424_v62 = vld [vmem:[#allocation14 + $0x8] sm:$0xff] }
 0x279   : > { %v837_v49 = vpop.trf.xlu0 }
 0x27a   : > { %1953 = vmatmul.mubr.msk.f32.gmra.mrb[4].mxu1 %vm850_vm0, %v837_v49 }
 0x27d   : > { %v838_v36 = vpop.trf.xlu0 }
 0x27e   : > { %1955 = vmatprep.mubr.msk.f32.mxu1 %vm850_vm0, %v838_v36 }
 0x281   : > { %v839_v43 = vpop.trf.xlu0 }
 0x282   : > { %1956 = vmatmul.mubr.msk.f32.gmra.mrb[6].mxu1 %vm850_vm0, %v839_v43  ;;  %v1425_v43 = vld [vmem:[#allocation14 + $0x10] sm:$0xff] }
 0x285   : > { %v840_v63 = vpop.trf.xlu0 }
 0x286   : > { %1958 = vmatprep.mubr.msk.f32.mxu1 %vm850_vm0, %v840_v63  ;;  %v1426_v63 = vld [vmem:[#allocation14 + $0x18] sm:$0xff] }
 0x289   : > { %v841_v0 = vpop.trf.xlu0 }
 0x28a   : > { %1959 = vmatmul.mubr.msk.f32.gmra.mrb[8].mxu1 %vm850_vm0, %v841_v0  ;;  %v1428_v0 = vld [vmem:[#allocation14 + $0x28] sm:$0xff] }
 0x28d   : > { %v842_v3 = vpop.trf.xlu0 }
 0x28e   : > { %1961 = vmatprep.mubr.msk.f32.mxu1 %vm850_vm0, %v842_v3  ;;  %v1429_v3 = vld [vmem:[#allocation14 + $0x30] sm:$0xff] }
 0x291   : > { %v843_v4 = vpop.trf.xlu0 }
 0x292   : > { %1962 = vmatmul.mubr.msk.f32.gmra.mrb[10].mxu1 %vm850_vm0, %v843_v4  ;;  %v1430_v4 = vld [vmem:[#allocation14 + $0x38] sm:$0xff] }
 0x295   : > { %v844_v5 = vpop.trf.xlu0 }
 0x296   : > { %1964 = vmatprep.mubr.msk.f32.mxu1 %vm850_vm0, %v844_v5  ;;  %v1431_v5 = vld [vmem:[#allocation14 + $0x40] sm:$0xff] }
 0x299   : > { %v845_v2 = vpop.trf.xlu0 }
 0x29a   : > { %1965 = vmatmul.mubr.msk.f32.gmra.mrb[12].mxu1 %vm850_vm0, %v845_v2  ;;  %v1432_v2 = vld [vmem:[#allocation14 + $0x48] sm:$0xff] }
 0x29d   : > { %v846_v6 = vpop.trf.xlu0 }
 0x29e   : > { %1967 = vmatprep.mubr.msk.f32.mxu1 %vm850_vm0, %v846_v6  ;;  %v2258_v6 = vpack.c.bf16 %v1432_v2, %v1431_v5 }
 0x2a1   : > { %v847_v7 = vpop.trf.xlu0 }
 0x2a2   : > { %1968 = vmatmul.mubr.msk.f32.gmra.mrb[14].mxu1 %vm850_vm0, %v847_v7  ;;  %v1433_v7 = vld [vmem:[#allocation14 + $0x50] sm:$0xff] }
 0x2a5   : > { %v848_v8 = vpop.trf.xlu0 }
 0x2a6   : > { %1970 = vmatprep.mubr.msk.f32.mxu1 %vm850_vm0, %v848_v8  ;;  %v1434_v8 = vld [vmem:[#allocation14 + $0x58] sm:$0xff] }
 0x2a7   : > { %v2262_v48 = vpack.c.bf16 %v1434_v8, %v1433_v7 }
 0x2a9   : > { %v849_v9 = vpop.trf.xlu0 }
 0x2aa   : > { %1971 = vmatmul.mubr.msk.f32.gmra.mrb[16].mxu1 %vm850_vm0, %v849_v9  ;;  %v1436_v9 = vld [vmem:[#allocation14 + $0x68] sm:$0xff] }
 0x2ab   : > { %2005 = vmatprep.mubr.f32.mxu1 %v594_v35 }
 0x2d1   : > { %v3180_v13 = vpop.f32.mrb[4].mxu0 }
 0x2d2   : > { %v3182_v18 = vpop.f32.mrb[5].mxu0 }
 0x345   : > { %v1951_v24 = vpop.f32.mrb[2].mxu1 }
 0x346   : > { %v1045_v27 = vmul.f32 %v1951_v24, %v3050_v11  ;;  %v965_v30 = vpop.f32.mrb[3].mxu1 }
 0x347   : > { %v1044_v33 = vmul.f32 %v965_v30, %v3048_v10  ;;  %v1438_v30 = vld [vmem:[#allocation14 + $0x78] sm:$0xff] }
 0x349   : > { %v2178_v34 = vpack.c.bf16 %v1045_v27, %v1044_v33  ;;  %v1437_v27 = vld [vmem:[#allocation14 + $0x70] sm:$0xff] }
 0x34a   : > { %v2270_v33 = vpack.c.bf16 %v1438_v30, %v1437_v27 }
 0x34b   : > { %2179 = vmatprep.subr.bf16.mxu1 %v2178_v34 }
 0x34c   : > { %2181 = vmatpush3.bf16.msra.mxu1 %v2178_v34  ;;  %v1323_v34 = vld [vmem:[#allocation2 + $0x19] sm:$0xff] }
 0x34d   : > { %v1954_v37 = vpop.f32.mrb[4].mxu1 }
 0x34e   : > { %v1047_v15 = vmul.f32 %v1954_v37, %v3056_v14  ;;  %v975_v38 = vpop.f32.mrb[5].mxu1  ;;  %v1326_v37 = vld [vmem:[#allocation12 + $0xd8] sm:$0xff] }
 0x34f   : > { %v1046_v60 = vmul.f32 %v975_v38, %v3052_v12  ;;  %v1331_v38 = vld [vmem:[#allocation2 + $0x1a] sm:$0xff] }
 0x351   : > { %v2182_v35 = vpack.c.bf16 %v1047_v15, %v1046_v60  ;;  %v1328_v15 = vmul.f32 %v1326_v37, %v1323_v34  ;;  %v1334_v60 = vld [vmem:[#allocation12 + $0xe8] sm:$0xff] }
 0x353   : > { %2183 = vmatprep.subr.bf16.mxu1 %v2182_v35 }
 0x354   : > { %2185 = vmatpush3.bf16.msra.mxu1 %v2182_v35  ;;  %v1330_v35 = vadd.f32 %v1328_v15, %v3157_v41 }
 0x355   : > { %v1957_v39 = vpop.f32.mrb[6].mxu1 }
 0x356   : > { %v1049_v40 = vmul.f32 %v1957_v39, %v3062_v17  ;;  %v985_v42 = vpop.f32.mrb[7].mxu1  ;;  %v1336_v39 = vmul.f32 %v1334_v60, %v1331_v38 }
 0x357   : > { %v1048_v11 = vmul.f32 %v985_v42, %v3060_v16 }
 0x358   : > { %v1338_v42 = vadd.f32 %v1336_v39, %v1330_v35 }
 0x359   : > { %v2186_v44 = vpack.c.bf16 %v1049_v40, %v1048_v11  ;;  %v1341_v40 = vld [vmem:[#allocation12 + $0xf8] sm:$0xff] }
 0x35a   : > { %v1343_v11 = vmul.f32 %v1341_v40, %v1331_v38 }
 0x35b   : > { %2187 = vmatprep.subr.bf16.mxu1 %v2186_v44 }
 0x35c   : > { %2189 = vmatpush3.bf16.msra.mxu1 %v2186_v44  ;;  %v1346_v44 = vld [vmem:[#allocation2 + $0x1b] sm:$0xff] }
 0x35d   : > { %v1960_v10 = vpop.f32.mrb[8].mxu1 }
 0x35e   : > { %v1051_v46 = vmul.f32 %v1960_v10, %v3068_v20  ;;  %v995_v47 = vpop.f32.mrb[9].mxu1  ;;  %v1349_v10 = vld [vmem:[#allocation12 + $0x108] sm:$0xff] }
 0x35f   : > { %v1050_v14 = vmul.f32 %v995_v47, %v3066_v19  ;;  %v1351_v47 = vmul.f32 %v1349_v10, %v1346_v44 }
 0x361   : > { %v2190_v50 = vpack.c.bf16 %v1051_v46, %v1050_v14  ;;  %v1345_v46 = vadd.f32 %v1343_v11, %v1338_v42  ;;  %v1354_v14 = vld [vmem:[#allocation2 + $0x1c] sm:$0xff] }
 0x363   : > { %2191 = vmatprep.subr.bf16.mxu1 %v2190_v50 }
 0x364   : > { %2193 = vmatpush3.bf16.msra.mxu1 %v2190_v50  ;;  %v1357_v50 = vld [vmem:[#allocation12 + $0x118] sm:$0xff] }
 0x365   : > { %v1963_v12 = vpop.f32.mrb[10].mxu1 }
 0x366   : > { %v1053_v51 = vmul.f32 %v1963_v12, %v3074_v23  ;;  %v1005_v52 = vpop.f32.mrb[11].mxu1  ;;  %v1353_v12 = vadd.f32 %v1351_v47, %v1345_v46 }
 0x367   : > { %v1052_v17 = vmul.f32 %v1005_v52, %v3072_v22  ;;  %v1362_v52 = vld [vmem:[#allocation2 + $0x1d] sm:$0xff] }
 0x369   : > { %v2194_v54 = vpack.c.bf16 %v1053_v51, %v1052_v17  ;;  %v1359_v51 = vmul.f32 %v1357_v50, %v1354_v14  ;;  %v1365_v17 = vld [vmem:[#allocation12 + $0x128] sm:$0xff] }
 0x36b   : > { %2195 = vmatprep.subr.bf16.mxu1 %v2194_v54 }
 0x36c   : > { %2197 = vmatpush3.bf16.msra.mxu1 %v2194_v54  ;;  %v1361_v54 = vadd.f32 %v1359_v51, %v1353_v12 }
 0x36d   : > { %v1966_v16 = vpop.f32.mrb[12].mxu1 }
 0x36e   : > { %v1055_v53 = vmul.f32 %v1966_v16, %v3080_v26  ;;  %v1015_v61 = vpop.f32.mrb[13].mxu1  ;;  %v1423_v26 = vld [vmem:[#allocation14] sm:$0xff]  ;;  %v1367_v16 = vmul.f32 %v1365_v17, %v1362_v52 }
 0x36f   : > { %v1054_v20 = vmul.f32 %v1015_v61, %v3078_v25  ;;  %v2242_v36 = vpack.c.bf16 %v1424_v62, %v1423_v26  ;;  %v1373_v61 = vld [vmem:[#allocation12 + $0x138] sm:$0xff]  ;;  %v1204_v26 = vadd.f32 1e-06, %v3182_v18 }
 0x371   : > { %v2198_v55 = vpack.c.bf16 %v1055_v53, %v1054_v20  ;;  %v1370_v53 = vld [vmem:[#allocation2 + $0x1e] sm:$0xff]  ;;  %v1369_v20 = vadd.f32 %v1367_v16, %v1361_v54 }
 0x372   : > { %v1375_v41 = vmul.f32 %v1373_v61, %v1370_v53 }
 0x373   : > { %2199 = vmatprep.subr.bf16.mxu1 %v2198_v55 }
 0x374   : > { %2201 = vmatpush3.bf16.msra.mxu1 %v2198_v55  ;;  %v1380_v55 = vld [vmem:[#allocation12 + $0x148] sm:$0xff] }
 0x375   : > { %v1969_v19 = vpop.f32.mrb[14].mxu1 }
 0x376   : > { %v1057_v56 = vmul.f32 %v1969_v19, %v3086_v29  ;;  %v1025_v57 = vpop.f32.mrb[15].mxu1  ;;  %v2246_v29 = vpack.c.bf16 %v1426_v63, %v1425_v43  ;;  %v1377_v19 = vadd.f32 %v1375_v41, %v1369_v20  ;;  %v1403_v43 = vld [vmem:[#allocation12 + $0x170] sm:$0xff] }
 0x377   : > { %v1056_v23 = vmul.f32 %v1025_v57, %v3084_v28  ;;  %v1427_v28 = vld [vmem:[#allocation14 + $0x20] sm:$0xff] }
 0x378   : > { %v1385_v57 = vld [vmem:[#allocation2 + $0x1f] sm:$0xff] }
 0x379   : > { %v2202_v1 = vpack.c.bf16 %v1057_v56, %v1056_v23  ;;  %v1382_v56 = vmul.f32 %v1380_v55, %v1370_v53  ;;  %v1388_v23 = vld [vmem:[#allocation12 + $0x158] sm:$0xff] }
 0x37b   : > { %2203 = vmatprep.subr.bf16.mxu1 %v2202_v1 }
 0x37c   : > { %2205 = vmatpush3.bf16.msra.mxu1 %v2202_v1  ;;  %v1384_v1 = vadd.f32 %v1382_v56, %v1377_v19 }
 0x37d   : > { %v1972_v22 = vpop.f32.mrb[16].mxu1 }
 0x37e   : > { %v1059_v59 = vmul.f32 %v1972_v22, %v3092_v32  ;;  %v1035_v21 = vpop.f32.mrb[17].mxu1  ;;  %v2250_v32 = vpack.c.bf16 %v1428_v0, %v1427_v28  ;;  %v1390_v22 = vmul.f32 %v1388_v23, %v1385_v57  ;;  %v1409_v28 = vld [vmem:[#allocation2 + $0x22] sm:$0xff]  ;;  %v1412_v0 = vld [vmem:[#allocation12 + $0x188] sm:$0xff] }
 0x37f   : > { %v1058_v25 = vmul.f32 %v1035_v21, %v3090_v31  ;;  %v2254_v31 = vpack.c.bf16 %v1430_v4, %v1429_v3  ;;  %v1396_v21 = vld [vmem:[#allocation12 + $0x168] sm:$0xff]  ;;  %v1411_v3 = vld [vmem:[#allocation12 + $0x180] sm:$0xff] }
 0x380   : > { %v1392_v62 = vadd.f32 %v1390_v22, %v1384_v1  ;;  %v1413_v18 = vmul.f32 %v1411_v3, %v1331_v38 }
 0x381   : > { %v2206_v49 = vpack.c.bf16 %v1059_v59, %v1058_v25  ;;  %v1209_v59 = vadd.f32 1e-06, %v3180_v13  ;;  %v1398_v25 = vmul.f32 0.0, %v1396_v21 }
 0x383   : > { %2207 = vmatprep.subr.bf16.mxu1 %v2206_v49  ;;  %2386 = vrcp.f32 %v1209_v59  ;;  %v1400_v63 = vadd.f32 %v1398_v25, %v1392_v62 }
 0x384   : > { %2209 = vmatpush3.bf16.msra.mxu1 %v2206_v49  ;;  %v1401_v49 = vld [vmem:[#allocation2 + $0x21] sm:$0xff]  ;;  %2388 = vrcp.f32 %v1204_v26 }
 0x385   : > { %2243 = vmatprep.subr.bf16.mxu1 %v2242_v36 }
 0x387   : > { %2006 = vmatmul.mubr.f32.vlgmr.msra.gmra.mrb[18].mxu1 %v595_v45  ;;  %v1435_v45 = vld [vmem:[#allocation14 + $0x60] sm:$0xff] }
 0x388   : > { %2245 = vmatpush3.bf16.msra.mxu1 %v2242_v36  ;;  %v2266_v24 = vpack.c.bf16 %v1436_v9, %v1435_v45  ;;  %v1404_v36 = vld [vmem:[#allocation12 + $0x178] sm:$0xff] }
 0x389   : > { %2247 = vmatprep.subr.bf16.mxu1 %v2246_v29 }
 0x38c   : > { %2249 = vmatpush3.bf16.msra.mxu1 %v2246_v29  ;;  %v1406_v29 = vmul.f32 %v1404_v36, %v1401_v49 }
 0x38d   : > { %2251 = vmatprep.subr.bf16.mxu1 %v2250_v32  ;;  %v2387_v5 = vpop.eup %2386 }
 0x38e   : > { %v1408_v4 = vadd.f32 %v1406_v29, %v1400_v63 }
 0x390   : > { %2253 = vmatpush3.bf16.msra.mxu1 %v2250_v32  ;;  %v1405_v32 = vmul.f32 %v1403_v43, %v1323_v34 }
 0x391   : > { %2255 = vmatprep.subr.bf16.mxu1 %v2254_v31 }
 0x392   : > { %v1407_v13 = vadd.f32 %v1405_v32, %v3160_v58  ;;  %v1706_v58 = vld [vmem:[%s3301_s1] ss:$0 sm:$0xff] }
 0x394   : > { %2257 = vmatpush3.bf16.msra.mxu1 %v2254_v31  ;;  %v1414_v31 = vmul.f32 %v1412_v0, %v1409_v28  ;;  %v1415_v9 = vadd.f32 %v1413_v18, %v1407_v13 }
 0x395   : > { %2259 = vmatprep.subr.bf16.mxu1 %v2258_v6 }
 0x396   : > { %v1416_v8 = vadd.f32 %v1414_v31, %v1408_v4 }
 0x398   : > { %2261 = vmatpush3.bf16.msra.mxu1 %v2258_v6  ;;  %v2389_v6 = vpop.eup %2388 }
 0x399   : > { %2263 = vmatprep.subr.bf16.mxu1 %v2262_v48 }
 0x39c   : > { %2265 = vmatpush3.bf16.msra.mxu1 %v2262_v48 }
 0x39d   : > { %2267 = vmatprep.subr.bf16.mxu1 %v2266_v24 }
 0x3a0   : > { %2269 = vmatpush3.bf16.msra.mxu1 %v2266_v24 }
 0x3a1   : > { %2271 = vmatprep.subr.bf16.mxu1 %v2270_v33 }
 0x3a4   : > { %2273 = vmatpush3.bf16.msra.mxu1 %v2270_v33 }
 0x45a   : > { %v2007_v2 = vpop.f32.mrb[18].mxu1 }
 0x45b   : > { %v1215_v7 = vmul.f32 %v2387_v5, %v2007_v2  ;;  %v1126_v48 = vpop.f32.mrb[19].mxu1 }
 0x45c   : > { %v1214_v45 = vmul.f32 %v2389_v6, %v1126_v48 }
 0x45d   : > { %v1418_v24 = vadd.f32 %v1416_v8, %v1215_v7 }
 0x45e   : > { %v1417_v27 = vadd.f32 %v1415_v9, %v1214_v45 }
 0x460   : > { %2075 = vmatprep.mubr.f32.mxu1 %v1417_v27 }
 0x461   : > { %2076 = vmatmul.mubr.f32.vlgmr.msra.gmra.mrb[20].mxu1 %v1418_v24 }
 0x534   : > { %v2077_v30 = vpop.f32.mrb[20].mxu1 }
 0x535   : > { %v1518_v33 = vadd.f32 %v2077_v30, %v1706_v58  ;;  %v1512_v34 = vpop.f32.mrb[21].mxu1 }
 0x536   : > { %v1513_v37 = vadd.f32 %v1706_v58, %v1512_v34 }
 0x537   : > { %1522 = vst [vmem:[%s491_s30 + $0x8] sm:$0xff] %v1518_v33 }
 0x538   : > { %1521 = vst [vmem:[%s491_s30] sm:$0xff] %v1513_v37 }
 0x539   : > { %2601 = shalt.err (!%p2598_p8)
}
 0x53a   : > { %s2602_s15 = scalar_lea.hbm %s3215_s28, 256  ;;  %s2606_s30 = scalar_lea.hbm %s3302_s29, 512 }
 0x53b   : > { %p2603_p4 = scmp.ne.s32.totalorder %s3215_s28, %s2602_s15  ;;  %p2607_p3 = scmp.lt.u32.totalorder %s3215_s28, %s3302_s29 }
 0x53c   : > { %p2608_p5 = scmp.lt.u32.totalorder %s2606_s30, %s2602_s15  ;;  %p2610_p6 = scmp.lt.u32.totalorder %s2602_s15, %s3215_s28 }
 0x53d   : > { %p2604_p10 = pnand %p2603_p4, %p3303_p9 }
 0x53e   : > { %p2609_p7 = por %p2608_p5, %p2607_p3 }
 0x53f   : > { %p2605_p11 = pneg %p2604_p10 }
 0x540   : > { %p2611_p12 = por %p2610_p6, %p2609_p7 }
 0x542   : > { %p2612_p1 = pnand %p2611_p12, %p2605_p11 }
 0x544   : > { %2615 = shalt.err (!%p2612_p1)
}
 0x545   : > { %s2679_s26 = smov 128   ;;  %s2680_s27 = smov 8  }
 0x546   : > { %2300 = dma.vmem_to_hbm [thread:$0]  (%p3303_p9), %s3217_s12, 256, %s3215_s28, %s1524_s23, %s2679_s26, %s2679_s26, %s2680_s27  }
 0x547 PF: > { %s1552_s22 = sand.u32 1, %s2654_s17   ;;  %p3304_p13 = scmp.ne.s32.totalorder %s3290_s25, 0 }
 0x548   : > { %p3305_p0 = scmp.ge.s32.totalorder %s2666_s20, 2  ;;  %s1553_s14 = scalar_lea.sflag [#allocation5], %s1552_s22 }
 0x54a   : > { %p2326_p2 = pnand %p3305_p0, %p3304_p13 }
 0x54c   : > { %2649 = dma.done.wait (!%p2326_p2), %s1553_s14, 256  }
 0x54d   : > { %2651 = vsyncadd (!%p2326_p2), %s1553_s14, 4294967040  ;;  %p27_p8 = scmp.ge.s32.totalorder %s2935_s16, 4   ;;  %s3306_s17 = smov %s2658_s18 }
 0x54e   : > { %s3307_s18 = smov %s2662_s19  ;;  %s3308_s19 = smov %s2946_s10 }
 0x54f   : > { %s3309_s20 = smov %s2935_s16  ;;  %29 = sbr.rel (!%p27_p8) target bundleno = 13 (0xd), region = 157 }
 0x556   :  { %1558 = vsyncpa [#allocation4], 1 }
 0x557   :  { %1560 = vsyncpa [#allocation4 + $0x1], 1 }
 0x558   :  { %1561 = vsyncpa [#allocation7], 1 }
 0x559   :  { %1562 = vsyncpa [#allocation10], 1 }
 0x55a   :  { %1563 = vsyncpa [#allocation13], 1 }
 0x55b   :  { %1564 = vsyncpa [#allocation5], 1 }
 0x55c   :  { %1566 = vsyncpa [#allocation5 + $0x1], 1 }

</bundles_post_ra>
